<compile_context>
chip_gen: v7x
topology: tpu7x:2x2x1
jax: 0.10.0
libtpu: 0.0.40
codegen_flags: <defaults>
</compile_context>

<pallas_src>
import functools
import math

import jax
import jax.numpy as jnp
from jax.experimental import pallas as pl
from jax.experimental.pallas import tpu as pltpu


def _conv3x3_im2col_kernel(top_ref, body_ref, bot_ref, w_ref, o_ref,
                           xstack_ref, xcol_ref, *, TH, W, C):
    """One (batch, row-tile) step of the 3x3 'SAME' conv (no bias).

    top_ref:    (W, C)          row just above the tile (garbage if first tile)
    body_ref:   (TH*W, C)       the tile's own rows, flattened row-major
    bot_ref:    (W, C)          row just below the tile (garbage if last tile)
    w_ref:      (9*C, Cout)     bf16 weights, taps flattened (ky, kx, cin)-major
    o_ref:      (TH*W, Cout)    conv output for the tile (no garbage columns)
    xstack_ref: ((TH+2)*W+2, C) scratch: [guard | top | body | bot | guard]
    xcol_ref:   (TH*W, 9*C)     bf16 scratch: im2col LHS
    """
    r = pl.program_id(1)
    nr = pl.num_programs(1)
    M = TH * W
    S = (TH + 2) * W + 2                       # rows in xstack

    # --- assemble [guard | top halo | body | bottom halo | guard] ------------
    # Halo rows that fall outside the image are the conv's zero padding.
    dt = body_ref.dtype
    top = jnp.where(r > 0, top_ref[...], 0.0).astype(dt)
    bot = jnp.where(r < nr - 1, bot_ref[...], 0.0).astype(dt)
    xstack_ref[0:1, :] = jnp.zeros((1, C), dt)
    xstack_ref[1:1 + W, :] = top
    xstack_ref[1 + W:1 + W + M, :] = body_ref[...]
    xstack_ref[1 + W + M:1 + W + M + W, :] = bot
    xstack_ref[S - 1:S, :] = jnp.zeros((1, C), dt)

    # --- im2col: tap (di, dj) is a flat sublane shift of di*W + dj -----------
    # Left/right conv padding: a dj=0 tap contributes zero to output column 0
    # and a dj=2 tap contributes zero to output column W-1 (those flat shifts
    # would otherwise wrap into the neighbouring row), so mask them here.
    col = jax.lax.broadcasted_iota(jnp.int32, (M, 1), 0) % W
    not_left = col != 0
    not_right = col != (W - 1)
    for di in range(3):                         # static 9-tap unroll (copies only)
        for dj in range(3):
            t = di * 3 + dj
            shift = di * W + dj
            win = xstack_ref[shift:shift + M, :]
            if dj == 0:
                win = jnp.where(not_left, win, 0.0)
            elif dj == 2:
                win = jnp.where(not_right, win, 0.0)
            xcol_ref[:, t * C:(t + 1) * C] = win.astype(xcol_ref.dtype)

    # --- one K = 9*C matmul on the MXU, f32 accumulation ---------------------
    acc = jnp.dot(xcol_ref[...], w_ref[...], preferred_element_type=jnp.float32)
    o_ref[...] = acc.astype(o_ref.dtype)


def _pick_tile_rows(H, W, Cout):
    """Largest divisor of H keeping TH*W <= ~2048 rows and the f32 output
    block around <= 2 MiB (far below even v7x's 64 MiB VMEM)."""
    cap = max(1, min(H, 2048 // max(W, 1), (2 << 20) // max(1, 4 * W * Cout)))
    th = cap
    while H % th:
        th -= 1
    return th


def upsample(x, weight, H, W, *, tile_rows=None):
    """x: (B, H*W, C), weight: (3, 3, C, 2C) HWIO  ->  (B, 4*H*W, C//2)."""
    B, L, C = x.shape
    assert L == H * W
    assert weight.shape[:3] == (3, 3, C)
    Cout = weight.shape[-1]
    assert Cout == 2 * C and Cout % 4 == 0, "PixelShuffle(2) needs 2*C % 4 == 0"
    Cq = Cout // 4
    assert W % 8 == 0, "W must be a multiple of 8 (sublane tiling)"
    # TODO(synk): for W % 8 != 0 or very small C (< 64 lanes) repack a W-tile
    # into lanes so loads/stores stay lane-dense.

    TH = _pick_tile_rows(H, W, Cout) if tile_rows is None else tile_rows
    assert H % TH == 0, "tile_rows must divide H"
    M = TH * W
    nr = H // TH

    # Weights: HWIO -> (9*C, Cout), bf16 (MXU-native); tiny one-time cast.
    w2 = weight.reshape(9 * C, Cout).astype(jnp.bfloat16)

    kernel = functools.partial(_conv3x3_im2col_kernel, TH=TH, W=W, C=C)

    itm = x.dtype.itemsize
    flops = 2 * B * H * W * 9 * C * Cout
    bytes_accessed = (itm * B * (H + 2 * nr) * W * C        # body + halo rows
                      + 2 * 9 * C * Cout                    # bf16 weights
                      + itm * B * H * W * Cout)             # conv output
    in_block = (M + 2 * W) * C * itm
    out_block = M * Cout * itm
    scratch_bytes = ((TH + 2) * W + 2) * C * itm + M * 9 * C * 2
    vmem_limit = int(min(48 << 20,                          # <= ~half v7x VMEM
                         max(32 << 20,
                             3 * (in_block + out_block) + 4 * 9 * C * Cout
                             + scratch_bytes + (4 << 20))))

    # Constant weight slab: fetched once; single-buffer it if supported.
    try:
        w_spec = pl.BlockSpec((9 * C, Cout), lambda b, r: (0, 0),
                              pipeline_mode=pl.Buffered(1))
    except TypeError:      # older BlockSpec without pipeline_mode
        w_spec = pl.BlockSpec((9 * C, Cout), lambda b, r: (0, 0))

    conv = pl.pallas_call(
        kernel,
        out_shape=jax.ShapeDtypeStruct((B, H * W, Cout), x.dtype),
        grid_spec=pltpu.PrefetchScalarGridSpec(
            num_scalar_prefetch=0,
            grid=(B, nr),
            in_specs=[
                # halo row above the tile (clamped at the border; zeroed
                # in-kernel when r == 0)
                pl.BlockSpec((None, W, C),
                             lambda b, r: (b, jnp.maximum(r * TH - 1, 0), 0)),
                # the tile itself: TH rows == TH*W flat tokens
                pl.BlockSpec((None, M, C), lambda b, r: (b, r, 0)),
                # halo row below the tile (clamped; zeroed when r == nr - 1)
                pl.BlockSpec((None, W, C),
                             lambda b, r: (b, jnp.minimum(r * TH + TH, H - 1), 0)),
                w_spec,
            ],
            out_specs=pl.BlockSpec((None, M, Cout), lambda b, r: (b, r, 0)),
            scratch_shapes=[
                pltpu.VMEM(((TH + 2) * W + 2, C), x.dtype),   # padded row stack
                pltpu.VMEM((M, 9 * C), jnp.bfloat16),         # im2col LHS
            ],
        ),
        compiler_params=pltpu.CompilerParams(
            dimension_semantics=("parallel", "parallel"),
            vmem_limit_bytes=vmem_limit),
        cost_estimate=pl.CostEstimate(flops=flops, transcendentals=0,
                                      bytes_accessed=int(bytes_accessed)),
    )(x, x, x, w2)
    # TODO(synk): when Cq >= 128, fold PixelShuffle into the kernel's stores
    # (permute weight output channels offline, emit (TH, 2, W, 2*Cq) tiles) to
    # save the post-kernel HBM round trip below.

    # --- PixelShuffle(2) + flatten back to (B, (2H)*(2W), C//2) --------------
    y = conv.reshape(B, H, W, Cq, 2, 2)          # channel o = cq*4 + i*2 + j
    y = jnp.transpose(y, (0, 1, 4, 2, 5, 3))     # (b, h, i, w, j, cq)
    return y.reshape(B, 4 * H * W, Cq)


upsample_jit = jax.jit(upsample, static_argnames=("H", "W", "tile_rows"))


def reference(x, weight, H, W):
    """Pure-JAX reference following the PyTorch module step by step."""
    B, L, C = x.shape
    img = x.reshape(B, H, W, C)
    conv = jax.lax.conv_general_dilated(
        img, weight, window_strides=(1, 1), padding="SAME",
        dimension_numbers=("NHWC", "HWIO", "NHWC"),
        precision=jax.lax.Precision.HIGHEST)
    nchw = jnp.transpose(conv, (0, 3, 1, 2))                    # (B, 2C, H, W)
    C2 = nchw.shape[1]
    Cq = C2 // 4
    ps = nchw.reshape(B, Cq, 2, 2, H, W)
    ps = jnp.transpose(ps, (0, 1, 4, 2, 5, 3)).reshape(B, Cq, 2 * H, 2 * W)
    return jnp.transpose(ps, (0, 2, 3, 1)).reshape(B, 4 * H * W, Cq)


if __name__ == "__main__":
    B, n_feat, H, W = 2, 8, 16, 16               # small, consistent with the module
    key = jax.random.PRNGKey(0)
    kx, kw = jax.random.split(key)

    x = jax.random.normal(kx, (B, H * W, n_feat), jnp.float32)
    bound = 1.0 / math.sqrt(n_feat * 9)          # PyTorch Conv2d default init scale
    weight = jax.random.uniform(kw, (3, 3, n_feat, 2 * n_feat), jnp.float32,
                                minval=-bound, maxval=bound)

    ref = reference(x, weight, H, W)

    # Default (auto tile) plus explicit multi-tile configs that exercise the
    # halo-row and border-masking paths.
    for tr in (None, 8, 4):
        out = jax.block_until_ready(upsample_jit(x, weight, H=H, W=W, tile_rows=tr))
        assert out.shape == (B, 4 * H * W, n_feat // 2)
        assert jnp.allclose(out, ref, atol=1e-2, rtol=1e-2), \
            f"mismatch vs reference (tile_rows={tr})"

    print("KERNEL_OK")
</pallas_src>

<mosaic_0001>
module attributes {stable_mosaic.version = 11 : i64} {
  func.func @_conv3x3_im2col_kernel(%arg0: i32, %arg1: i32, %arg2: memref<1x16x8xf32, #tpu.memory_space<vmem>>, %arg3: memref<1x256x8xf32, #tpu.memory_space<vmem>>, %arg4: memref<1x16x8xf32, #tpu.memory_space<vmem>>, %arg5: memref<72x16xbf16, #tpu.memory_space<vmem>>, %arg6: memref<1x256x16xf32, #tpu.memory_space<vmem>>, %arg7: memref<290x8xf32, #tpu.memory_space<vmem>>, %arg8: memref<256x72xbf16, #tpu.memory_space<vmem>>) attributes {dimension_semantics = [#tpu.dimension_semantics<parallel>, #tpu.dimension_semantics<parallel>], iteration_bounds = array<i64: 2, 1>, scalar_prefetch = 0 : i64, scratch_operands = 2 : i64, tpu.core_type = #tpu.core_type<tc>, window_params = [{transform_indices = @transform_0, window_bounds = array<i64: 1, 16, 8>}, {transform_indices = @transform_1, window_bounds = array<i64: 1, 256, 8>}, {transform_indices = @transform_2, window_bounds = array<i64: 1, 16, 8>}, {pipeline_mode = #tpu.pipeline_mode<synchronous>, transform_indices = @transform_3, window_bounds = array<i64: 72, 16>}, {transform_indices = @transform_4, window_bounds = array<i64: 1, 256, 16>}]} {
    %c0_i32 = arith.constant 0 : i32
    %0 = arith.cmpi sgt, %arg1, %c0_i32 : i32
    %c0 = arith.constant 0 : index
    %c0_0 = arith.constant 0 : index
    %c0_1 = arith.constant 0 : index
    %1 = vector.load %arg2[%c0, %c0_0, %c0_1] : memref<1x16x8xf32, #tpu.memory_space<vmem>>, vector<1x16x8xf32>
    %2 = vector.shape_cast %1 : vector<1x16x8xf32> to vector<16x8xf32>
    %cst = arith.constant 0.000000e+00 : f32
    %3 = vector.broadcast %cst : f32 to vector<16x8xf32>
    %4 = arith.select %0, %2, %3 : vector<16x8xf32>
    %c0_i32_2 = arith.constant 0 : i32
    %5 = arith.cmpi slt, %arg1, %c0_i32_2 : i32
    %c0_3 = arith.constant 0 : index
    %c0_4 = arith.constant 0 : index
    %c0_5 = arith.constant 0 : index
    %6 = vector.load %arg4[%c0_3, %c0_4, %c0_5] : memref<1x16x8xf32, #tpu.memory_space<vmem>>, vector<1x16x8xf32>
    %7 = vector.shape_cast %6 : vector<1x16x8xf32> to vector<16x8xf32>
    %cst_6 = arith.constant 0.000000e+00 : f32
    %8 = vector.broadcast %cst_6 : f32 to vector<16x8xf32>
    %9 = arith.select %5, %7, %8 : vector<16x8xf32>
    %cst_7 = arith.constant 0.000000e+00 : f32
    %10 = vector.broadcast %cst_7 : f32 to vector<1x8xf32>
    %c0_8 = arith.constant 0 : index
    %c0_9 = arith.constant 0 : index
    %11 = vector.load %arg7[%c0_8, %c0_9] : memref<290x8xf32, #tpu.memory_space<vmem>>, vector<1x8xf32>
    tpu.vector_store %arg7[%c0_8, %c0_9], %10 {strides = array<i32>} : memref<290x8xf32, #tpu.memory_space<vmem>>, vector<1x8xf32>,
    %c1 = arith.constant 1 : index
    %c0_10 = arith.constant 0 : index
    %12 = vector.load %arg7[%c1, %c0_10] : memref<290x8xf32, #tpu.memory_space<vmem>>, vector<16x8xf32>
    tpu.vector_store %arg7[%c1, %c0_10], %4 {strides = array<i32>} : memref<290x8xf32, #tpu.memory_space<vmem>>, vector<16x8xf32>,
    %c0_11 = arith.constant 0 : index
    %c0_12 = arith.constant 0 : index
    %c0_13 = arith.constant 0 : index
    %13 = vector.load %arg3[%c0_11, %c0_12, %c0_13] : memref<1x256x8xf32, #tpu.memory_space<vmem>>, vector<1x256x8xf32>
    %14 = vector.shape_cast %13 : vector<1x256x8xf32> to vector<256x8xf32>
    %c17 = arith.constant 17 : index
    %c0_14 = arith.constant 0 : index
    %15 = vector.load %arg7[%c17, %c0_14] : memref<290x8xf32, #tpu.memory_space<vmem>>, vector<256x8xf32>
    tpu.vector_store %arg7[%c17, %c0_14], %14 {strides = array<i32>} : memref<290x8xf32, #tpu.memory_space<vmem>>, vector<256x8xf32>,
    %c273 = arith.constant 273 : index
    %c0_15 = arith.constant 0 : index
    %16 = vector.load %arg7[%c273, %c0_15] : memref<290x8xf32, #tpu.memory_space<vmem>>, vector<16x8xf32>
    tpu.vector_store %arg7[%c273, %c0_15], %9 {strides = array<i32>} : memref<290x8xf32, #tpu.memory_space<vmem>>, vector<16x8xf32>,
    %cst_16 = arith.constant 0.000000e+00 : f32
    %17 = vector.broadcast %cst_16 : f32 to vector<1x8xf32>
    %c289 = arith.constant 289 : index
    %c0_17 = arith.constant 0 : index
    %18 = vector.load %arg7[%c289, %c0_17] : memref<290x8xf32, #tpu.memory_space<vmem>>, vector<1x8xf32>
    tpu.vector_store %arg7[%c289, %c0_17], %17 {strides = array<i32>} : memref<290x8xf32, #tpu.memory_space<vmem>>, vector<1x8xf32>,
    %19 = tpu.iota {dimensions = array<i32: 0>} : vector<256x1xi32>
    %c16_i32 = arith.constant 16 : i32
    %c0_i32_18 = arith.constant 0 : i32
    %20 = arith.cmpi eq, %c16_i32, %c0_i32_18 : i32
    %c1_i32 = arith.constant 1 : i32
    %21 = arith.select %20, %c1_i32, %c16_i32 : i32
    %22 = vector.broadcast %21 : i32 to vector<256x1xi32>
    %23 = arith.remsi %19, %22 : vector<256x1xi32>
    %c0_i32_19 = arith.constant 0 : i32
    %24 = vector.broadcast %c0_i32_19 : i32 to vector<256x1xi32>
    %25 = arith.cmpi ne, %23, %24 : vector<256x1xi32>
    %c0_i32_20 = arith.constant 0 : i32
    %26 = vector.broadcast %c0_i32_20 : i32 to vector<256x1xi32>
    %27 = arith.cmpi slt, %23, %26 : vector<256x1xi32>
    %c0_i32_21 = arith.constant 0 : i32
    %28 = arith.cmpi slt, %21, %c0_i32_21 : i32
    %29 = vector.broadcast %28 : i1 to vector<256x1xi1>
    %30 = vector.broadcast %29 : vector<256x1xi1> to vector<256x1xi1>
    %31 = arith.xori %27, %30 : vector<256x1xi1>
    %32 = arith.andi %31, %25 : vector<256x1xi1>
    %33 = vector.broadcast %21 : i32 to vector<256x1xi32>
    %34 = arith.addi %23, %33 : vector<256x1xi32>
    %35 = arith.select %32, %34, %23 : vector<256x1xi1>, vector<256x1xi32>
    %c0_i32_22 = arith.constant 0 : i32
    %36 = vector.broadcast %c0_i32_22 : i32 to vector<256x1xi32>
    %37 = arith.cmpi ne, %35, %36 : vector<256x1xi32>
    %c15_i32 = arith.constant 15 : i32
    %38 = vector.broadcast %c15_i32 : i32 to vector<256x1xi32>
    %39 = arith.cmpi ne, %35, %38 : vector<256x1xi32>
    %c0_23 = arith.constant 0 : index
    %c0_24 = arith.constant 0 : index
    %40 = vector.load %arg7[%c0_23, %c0_24] : memref<290x8xf32, #tpu.memory_space<vmem>>, vector<256x8xf32>
    %cst_25 = arith.constant 0.000000e+00 : f32
    %41 = vector.shape_cast %37 : vector<256x1xi1> to vector<256x1xi1>
    %42 = vector.broadcast %41 : vector<256x1xi1> to vector<256x8xi1>
    %43 = vector.broadcast %cst_25 : f32 to vector<256x8xf32>
    %44 = arith.select %42, %40, %43 : vector<256x8xi1>, vector<256x8xf32>
    %45 = arith.truncf %44 : vector<256x8xf32> to vector<256x8xbf16>
    %c0_26 = arith.constant 0 : index
    %c0_27 = arith.constant 0 : index
    %46 = vector.load %arg8[%c0_26, %c0_27] : memref<256x72xbf16, #tpu.memory_space<vmem>>, vector<256x8xbf16>
    tpu.vector_store %arg8[%c0_26, %c0_27], %45 {strides = array<i32>} : memref<256x72xbf16, #tpu.memory_space<vmem>>, vector<256x8xbf16>,
    %c1_28 = arith.constant 1 : index
    %c0_29 = arith.constant 0 : index
    %47 = vector.load %arg7[%c1_28, %c0_29] : memref<290x8xf32, #tpu.memory_space<vmem>>, vector<256x8xf32>
    %48 = arith.truncf %47 : vector<256x8xf32> to vector<256x8xbf16>
    %c0_30 = arith.constant 0 : index
    %c8 = arith.constant 8 : index
    %49 = vector.load %arg8[%c0_30, %c8] : memref<256x72xbf16, #tpu.memory_space<vmem>>, vector<256x8xbf16>
    tpu.vector_store %arg8[%c0_30, %c8], %48 {strides = array<i32>} : memref<256x72xbf16, #tpu.memory_space<vmem>>, vector<256x8xbf16>,
    %c2 = arith.constant 2 : index
    %c0_31 = arith.constant 0 : index
    %50 = vector.load %arg7[%c2, %c0_31] : memref<290x8xf32, #tpu.memory_space<vmem>>, vector<256x8xf32>
    %cst_32 = arith.constant 0.000000e+00 : f32
    %51 = vector.shape_cast %39 : vector<256x1xi1> to vector<256x1xi1>
    %52 = vector.broadcast %51 : vector<256x1xi1> to vector<256x8xi1>
    %53 = vector.broadcast %cst_32 : f32 to vector<256x8xf32>
    %54 = arith.select %52, %50, %53 : vector<256x8xi1>, vector<256x8xf32>
    %55 = arith.truncf %54 : vector<256x8xf32> to vector<256x8xbf16>
    %c0_33 = arith.constant 0 : index
    %c16 = arith.constant 16 : index
    %56 = vector.load %arg8[%c0_33, %c16] : memref<256x72xbf16, #tpu.memory_space<vmem>>, vector<256x8xbf16>
    tpu.vector_store %arg8[%c0_33, %c16], %55 {strides = array<i32>} : memref<256x72xbf16, #tpu.memory_space<vmem>>, vector<256x8xbf16>,
    %c16_34 = arith.constant 16 : index
    %c0_35 = arith.constant 0 : index
    %57 = vector.load %arg7[%c16_34, %c0_35] : memref<290x8xf32, #tpu.memory_space<vmem>>, vector<256x8xf32>
    %cst_36 = arith.constant 0.000000e+00 : f32
    %58 = vector.shape_cast %37 : vector<256x1xi1> to vector<256x1xi1>
    %59 = vector.broadcast %58 : vector<256x1xi1> to vector<256x8xi1>
    %60 = vector.broadcast %cst_36 : f32 to vector<256x8xf32>
    %61 = arith.select %59, %57, %60 : vector<256x8xi1>, vector<256x8xf32>
    %62 = arith.truncf %61 : vector<256x8xf32> to vector<256x8xbf16>
    %c0_37 = arith.constant 0 : index
    %c24 = arith.constant 24 : index
    %63 = vector.load %arg8[%c0_37, %c24] : memref<256x72xbf16, #tpu.memory_space<vmem>>, vector<256x8xbf16>
    tpu.vector_store %arg8[%c0_37, %c24], %62 {strides = array<i32>} : memref<256x72xbf16, #tpu.memory_space<vmem>>, vector<256x8xbf16>,
    %c17_38 = arith.constant 17 : index
    %c0_39 = arith.constant 0 : index
    %64 = vector.load %arg7[%c17_38, %c0_39] : memref<290x8xf32, #tpu.memory_space<vmem>>, vector<256x8xf32>
    %65 = arith.truncf %64 : vector<256x8xf32> to vector<256x8xbf16>
    %c0_40 = arith.constant 0 : index
    %c32 = arith.constant 32 : index
    %66 = vector.load %arg8[%c0_40, %c32] : memref<256x72xbf16, #tpu.memory_space<vmem>>, vector<256x8xbf16>
    tpu.vector_store %arg8[%c0_40, %c32], %65 {strides = array<i32>} : memref<256x72xbf16, #tpu.memory_space<vmem>>, vector<256x8xbf16>,
    %c18 = arith.constant 18 : index
    %c0_41 = arith.constant 0 : index
    %67 = vector.load %arg7[%c18, %c0_41] : memref<290x8xf32, #tpu.memory_space<vmem>>, vector<256x8xf32>
    %cst_42 = arith.constant 0.000000e+00 : f32
    %68 = vector.shape_cast %39 : vector<256x1xi1> to vector<256x1xi1>
    %69 = vector.broadcast %68 : vector<256x1xi1> to vector<256x8xi1>
    %70 = vector.broadcast %cst_42 : f32 to vector<256x8xf32>
    %71 = arith.select %69, %67, %70 : vector<256x8xi1>, vector<256x8xf32>
    %72 = arith.truncf %71 : vector<256x8xf32> to vector<256x8xbf16>
    %c0_43 = arith.constant 0 : index
    %c40 = arith.constant 40 : index
    %73 = vector.load %arg8[%c0_43, %c40] : memref<256x72xbf16, #tpu.memory_space<vmem>>, vector<256x8xbf16>
    tpu.vector_store %arg8[%c0_43, %c40], %72 {strides = array<i32>} : memref<256x72xbf16, #tpu.memory_space<vmem>>, vector<256x8xbf16>,
    %c32_44 = arith.constant 32 : index
    %c0_45 = arith.constant 0 : index
    %74 = vector.load %arg7[%c32_44, %c0_45] : memref<290x8xf32, #tpu.memory_space<vmem>>, vector<256x8xf32>
    %cst_46 = arith.constant 0.000000e+00 : f32
    %75 = vector.shape_cast %37 : vector<256x1xi1> to vector<256x1xi1>
    %76 = vector.broadcast %75 : vector<256x1xi1> to vector<256x8xi1>
    %77 = vector.broadcast %cst_46 : f32 to vector<256x8xf32>
    %78 = arith.select %76, %74, %77 : vector<256x8xi1>, vector<256x8xf32>
    %79 = arith.truncf %78 : vector<256x8xf32> to vector<256x8xbf16>
    %c0_47 = arith.constant 0 : index
    %c48 = arith.constant 48 : index
    %80 = vector.load %arg8[%c0_47, %c48] : memref<256x72xbf16, #tpu.memory_space<vmem>>, vector<256x8xbf16>
    tpu.vector_store %arg8[%c0_47, %c48], %79 {strides = array<i32>} : memref<256x72xbf16, #tpu.memory_space<vmem>>, vector<256x8xbf16>,
    %c33 = arith.constant 33 : index
    %c0_48 = arith.constant 0 : index
    %81 = vector.load %arg7[%c33, %c0_48] : memref<290x8xf32, #tpu.memory_space<vmem>>, vector<256x8xf32>
    %82 = arith.truncf %81 : vector<256x8xf32> to vector<256x8xbf16>
    %c0_49 = arith.constant 0 : index
    %c56 = arith.constant 56 : index
    %83 = vector.load %arg8[%c0_49, %c56] : memref<256x72xbf16, #tpu.memory_space<vmem>>, vector<256x8xbf16>
    tpu.vector_store %arg8[%c0_49, %c56], %82 {strides = array<i32>} : memref<256x72xbf16, #tpu.memory_space<vmem>>, vector<256x8xbf16>,
    %c34 = arith.constant 34 : index
    %c0_50 = arith.constant 0 : index
    %84 = vector.load %arg7[%c34, %c0_50] : memref<290x8xf32, #tpu.memory_space<vmem>>, vector<256x8xf32>
    %cst_51 = arith.constant 0.000000e+00 : f32
    %85 = vector.shape_cast %39 : vector<256x1xi1> to vector<256x1xi1>
    %86 = vector.broadcast %85 : vector<256x1xi1> to vector<256x8xi1>
    %87 = vector.broadcast %cst_51 : f32 to vector<256x8xf32>
    %88 = arith.select %86, %84, %87 : vector<256x8xi1>, vector<256x8xf32>
    %89 = arith.truncf %88 : vector<256x8xf32> to vector<256x8xbf16>
    %c0_52 = arith.constant 0 : index
    %c64 = arith.constant 64 : index
    %90 = vector.load %arg8[%c0_52, %c64] : memref<256x72xbf16, #tpu.memory_space<vmem>>, vector<256x8xbf16>
    tpu.vector_store %arg8[%c0_52, %c64], %89 {strides = array<i32>} : memref<256x72xbf16, #tpu.memory_space<vmem>>, vector<256x8xbf16>,
    %c0_53 = arith.constant 0 : index
    %c0_54 = arith.constant 0 : index
    %91 = vector.load %arg8[%c0_53, %c0_54] : memref<256x72xbf16, #tpu.memory_space<vmem>>, vector<256x72xbf16>
    %c0_55 = arith.constant 0 : index
    %c0_56 = arith.constant 0 : index
    %92 = vector.load %arg5[%c0_55, %c0_56] : memref<72x16xbf16, #tpu.memory_space<vmem>>, vector<72x16xbf16>
    %cst_57 = arith.constant dense<0.000000e+00> : vector<256x16xf32>
    %93 = tpu.matmul %91, %92, %cst_57 {dimension_numbers = #tpu.dot_dimension_numbers<[1], [0], [0], [1], [0, 0, 1, 1], [], []>} : vector<256x72xbf16>, vector<72x16xbf16>, vector<256x16xf32> -> vector<256x16xf32>
    %c0_58 = arith.constant 0 : index
    %c0_59 = arith.constant 0 : index
    %c0_60 = arith.constant 0 : index
    %94 = vector.load %arg6[%c0_58, %c0_59, %c0_60] : memref<1x256x16xf32, #tpu.memory_space<vmem>>, vector<1x256x16xf32>
    %95 = vector.shape_cast %94 : vector<1x256x16xf32> to vector<256x16xf32>
    %96 = vector.shape_cast %93 : vector<256x16xf32> to vector<1x256x16xf32>
    tpu.vector_store %arg6[%c0_58, %c0_59, %c0_60], %96 {strides = array<i32>} : memref<1x256x16xf32, #tpu.memory_space<vmem>>, vector<1x256x16xf32>,
    return
  }
  func.func @transform_0(%arg0: i32, %arg1: i32) -> (i32, i32, i32) {
    %c16_i32 = arith.constant 16 : i32
    %0 = arith.muli %arg1, %c16_i32 : i32
    %c1_i32 = arith.constant 1 : i32
    %1 = arith.subi %0, %c1_i32 : i32
    %c0_i32 = arith.constant 0 : i32
    %2 = arith.maxsi %1, %c0_i32 : i32
    %c0_i32_0 = arith.constant 0 : i32
    %c0_i32_1 = arith.constant 0 : i32
    return %arg0, %2, %c0_i32_0 : i32, i32, i32
  }
  func.func @transform_1(%arg0: i32, %arg1: i32) -> (i32, i32, i32) {
    %c0_i32 = arith.constant 0 : i32
    %c0_i32_0 = arith.constant 0 : i32
    return %arg0, %arg1, %c0_i32 : i32, i32, i32
  }
  func.func @transform_2(%arg0: i32, %arg1: i32) -> (i32, i32, i32) {
    %c16_i32 = arith.constant 16 : i32
    %0 = arith.muli %arg1, %c16_i32 : i32
    %c16_i32_0 = arith.constant 16 : i32
    %1 = arith.addi %0, %c16_i32_0 : i32
    %c15_i32 = arith.constant 15 : i32
    %2 = arith.minsi %1, %c15_i32 : i32
    %c0_i32 = arith.constant 0 : i32
    %c0_i32_1 = arith.constant 0 : i32
    return %arg0, %2, %c0_i32 : i32, i32, i32
  }
  func.func @transform_3(%arg0: i32, %arg1: i32) -> (i32, i32) {
    %c0_i32 = arith.constant 0 : i32
    %c0_i32_0 = arith.constant 0 : i32
    %c0_i32_1 = arith.constant 0 : i32
    return %c0_i32, %c0_i32_0 : i32, i32
  }
  func.func @transform_4(%arg0: i32, %arg1: i32) -> (i32, i32, i32) {
    %c0_i32 = arith.constant 0 : i32
    %c0_i32_0 = arith.constant 0 : i32
    return %arg0, %arg1, %c0_i32 : i32, i32, i32
  }
}

</mosaic_0001>

<bundles_post_ra>
// kernel: upsample.1
= control target key start
LH: loop header
LB: loop body
LE: loop exit
PB: predicated region body
PF: predicated region fallthrough
CT: control target
= control target key end

     0   :  { %s2985_s15 = smov 0   ;;  %s2987_s16 = smov 0   ;;  %s4156_s0 = inlined_call_operand.vmem [shape: f32[2,256,8], index: 0, kind: input, shape index: {}, may-alias: {0,1,2}]   ;;  %s4157_s1 = inlined_call_operand.vmem [shape: f32[2,256,8], index: 1, kind: input, shape index: {}, may-alias: {0,1,2}]   ;;  %s4158_s2 = inlined_call_operand.vmem [shape: f32[2,256,8], index: 2, kind: input, shape index: {}, may-alias: {0,1,2}]   ;;  %s4159_s3 = inlined_call_operand.vmem [shape: bf16[72,16], index: 3, kind: input, shape index: {}]   ;;  %s4160_s4 = inlined_call_operand.vmem [shape: f32[2,256,16], index: 4, kind: output, shape index: {}]  }
   0x1   :  { %s2989_s17 = smov 0  }
   0x2 LB: > { %s26_s0 = sadd.s32 1, %s2945_s16  ;;  %p2777_p0 = scmp.ge.s32.totalorder %s2949_s17, 1  ;;  %s2949_s17 = sphi %s2989_s17, %s14_s17   ;;  %s2945_s16 = sphi %s2987_s16, %s4268_s16   ;;  %s2941_s15 = sphi %s2985_s15, %s4267_s15  }
   0x3   : > { %p28_p1 = scmp.ge.s32.totalorder %s26_s0, 2  ;;  %p249_p2 = scmp.lt.s32.totalorder %s2949_s17, 3 }
   0x5   : > { %s4270_s0 = smov (%p28_p1, %s26_s0), 0  ;;  %p250_p3 = pnand %p2777_p0, %p249_p2 }
   0x6   : > { %vm384_vm0 = vcmask (!%p250_p3), 64512   ;;  %p328_p4 = scmp.lt.s32.totalorder (!%p250_p3), %s2941_s15, 1  ;;  %v454_v0 = vlaneseq (!%p250_p3)  ;;  %v2951_v1 = vmov (!%p250_p3), 0.0   ;;  %vm382_vm1 = vcmask (!%p250_p3), 57344   ;;  %s2952_s21 = smov (!%p250_p3), 8  }
   0x7   : > { %253 = sbr.rel (%p250_p3) target bundleno = 620 (0x26c), region = 36  ;;  %385 = vst.msk [vmem:[#allocation2 + $0x1] sm:$0xff] (!%p250_p3), %vm384_vm0, %v2951_v1  ;;  %386 = vst.msk [vmem:[#allocation2 + $0x9] sm:$0xff] (!%p250_p3), %vm384_vm0, %v2951_v1  ;;  %s2953_s22 = smov (!%p250_p3), 16   ;;  %vm2452_vm14 = vcmask (!%p250_p3), 1043456  }
   0x8   : > { %451 = vst.msk [vmem:[#allocation2 + $0x111] sm:$0xff] (!%p250_p3), %vm384_vm0, %v2951_v1  ;;  %452 = vst.msk [vmem:[#allocation2 + $0x119] sm:$0xff] (!%p250_p3), %vm384_vm0, %v2951_v1  ;;  %v3009_v2 = vshrl.u32 (!%p250_p3), %v454_v0, 7  ;;  %s2954_s23 = smov (!%p250_p3), 24   ;;  %s2955_s24 = smov (!%p250_p3), 32  }
   0x9   : > { %383 = vst.msk [vmem:[#allocation2] sm:$0x1] (!%p250_p3), %vm382_vm1, %v2951_v1  ;;  %453 = vst.msk [vmem:[#allocation2 + $0x121] sm:$0x1] (!%p250_p3), %vm382_vm1, %v2951_v1  ;;  %s2956_s25 = smov (!%p250_p3), 40   ;;  %s2957_s28 = smov (!%p250_p3), 48  }
   0xa   : > { %v456_v6 = vadd.s32 (!%p250_p3), 8, %v3009_v2  ;;  %v472_v10 = vadd.s32 (!%p250_p3), 136, %v3009_v2  ;;  %v458_v13 = vadd.s32 (!%p250_p3), 24, %v3009_v2  ;;  %v474_v23 = vadd.s32 (!%p250_p3), 152, %v3009_v2  ;;  %s2958_s7 = smov (!%p250_p3), 56   ;;  %s2959_s12 = smov (!%p250_p3), 64  }
   0xb   : > { %v471_v43 = vadd.s32 (!%p250_p3), 128, %v3009_v2  ;;  %v491_v48 = vand.u32 (!%p250_p3), 15, %v3009_v2  ;;  %v457_v49 = vadd.s32 (!%p250_p3), 16, %v3009_v2  ;;  %v473_v61 = vadd.s32 (!%p250_p3), 144, %v3009_v2 }
   0xc   : > { %v498_v18 = vand.u32 (!%p250_p3), 15, %v456_v6  ;;  %v610_v22 = vand.u32 (!%p250_p3), 15, %v472_v10  ;;  %v512_v27 = vand.u32 (!%p250_p3), 15, %v458_v13  ;;  %v624_v42 = vand.u32 (!%p250_p3), 15, %v474_v23 }
   0xd   : > { %v603_v60 = vand.u32 (!%p250_p3), 15, %v471_v43  ;;  %vm3102_vm6 = vcmp.ne.s32.totalorder (!%p250_p3), %v491_v48, 0  ;;  %v505_v0 = vand.u32 (!%p250_p3), 15, %v457_v49  ;;  %v617_v10 = vand.u32 (!%p250_p3), 15, %v473_v61 }
   0xe   : > { %s4272_s15 = smov (!%p328_p4, %s2941_s15), 1  ;;  %v1095_v11 = vld [vmem:[#allocation2 + $0x1] sm:$0xff]  ;;  %v1096_v12 = vld [vmem:[#allocation2 + $0x9] sm:$0xff]  ;;  %vm3060_vm2 = vcmp.ne.s32.totalorder %v498_v18, 15  ;;  %vm3068_vm3 = vcmp.ne.s32.totalorder %v610_v22, 15  ;;  %vm3073_vm4 = vcmp.ne.s32.totalorder %v512_v27, 15 }
   0xf   : > { %s2810_s2 = sshll.u32 %s4272_s15, 8  ;;  %v1127_v14 = vpack.c.bf16 %v1096_v12, %v1095_v11  ;;  %v1224_v30 = vld [vmem:[#allocation2 + $0x2] sm:$0xff]  ;;  %vm3095_vm5 = vcmp.ne.s32.totalorder %v624_v42, 15  ;;  %vm3120_vm7 = vcmp.ne.s32.totalorder %v603_v60, 0  ;;  %vm3124_vm8 = vcmp.ne.s32.totalorder %v505_v0, 0 }
  0x10   : > { %s3017_s20 = scalar_lea.vmem %s4157_s1, %s2810_s2  ;;  %vm3140_vm9 = vcmp.ne.s32.totalorder %v617_v10, 0  ;;  %s4081_s18 = scalar_lea.vmem %s4160_s4, %s2810_s2 }
  0x11   : > { %v387_v3 = vld [vmem:[%s3017_s20] sm:$0xff]  ;;  %v388_v4 = vld [vmem:[%s3017_s20 + $0x8] sm:$0xff]  ;;  %v401_v5 = vld [vmem:[%s3017_s20 + $0x70] sm:$0xff]  ;;  %1159 = vrot.lane.b32.xlu0 %v1127_v14, %s2952_s21 }
  0x12   : > { %419 = vst.msk [vmem:[#allocation2 + $0x11] sm:$0xff] %vm384_vm0, %v387_v3  ;;  %420 = vst.msk [vmem:[#allocation2 + $0x19] sm:$0xff] %vm384_vm0, %v388_v4  ;;  %v402_v7 = vld [vmem:[%s3017_s20 + $0x78] sm:$0xff]  ;;  %v403_v8 = vld [vmem:[%s3017_s20 + $0x80] sm:$0xff] }
  0x13   : > { %433 = vst.msk [vmem:[#allocation2 + $0x81] sm:$0xff] %vm384_vm0, %v401_v5  ;;  %v404_v9 = vld [vmem:[%s3017_s20 + $0x88] sm:$0xff]  ;;  %434 = vst.msk [vmem:[#allocation2 + $0x89] sm:$0xff] %vm384_vm0, %v402_v7  ;;  %v389_v15 = vld [vmem:[%s3017_s20 + $0x10] sm:$0xff] }
  0x14   : > { %435 = vst.msk [vmem:[#allocation2 + $0x91] sm:$0xff] %vm384_vm0, %v403_v8  ;;  %436 = vst.msk [vmem:[#allocation2 + $0x99] sm:$0xff] %vm384_vm0, %v404_v9  ;;  %v405_v16 = vld [vmem:[%s3017_s20 + $0x90] sm:$0xff]  ;;  %v390_v17 = vld [vmem:[%s3017_s20 + $0x18] sm:$0xff] }
  0x15   : > { %421 = vst.msk [vmem:[#allocation2 + $0x21] sm:$0xff] %vm384_vm0, %v389_v15  ;;  %437 = vst.msk [vmem:[#allocation2 + $0xa1] sm:$0xff] %vm384_vm0, %v405_v16  ;;  %v406_v19 = vld [vmem:[%s3017_s20 + $0x98] sm:$0xff]  ;;  %v391_v20 = vld [vmem:[%s3017_s20 + $0x20] sm:$0xff] }
  0x16   : > { %422 = vst.msk [vmem:[#allocation2 + $0x29] sm:$0xff] %vm384_vm0, %v390_v17  ;;  %v407_v21 = vld [vmem:[%s3017_s20 + $0xa0] sm:$0xff]  ;;  %438 = vst.msk [vmem:[#allocation2 + $0xa9] sm:$0xff] %vm384_vm0, %v406_v19  ;;  %v392_v24 = vld [vmem:[%s3017_s20 + $0x28] sm:$0xff]  ;;  %v461_v19 = vadd.s32 48, %v3009_v2 }
  0x17   : > { %423 = vst.msk [vmem:[#allocation2 + $0x31] sm:$0xff] %vm384_vm0, %v391_v20  ;;  %439 = vst.msk [vmem:[#allocation2 + $0xb1] sm:$0xff] %vm384_vm0, %v407_v21  ;;  %v408_v25 = vld [vmem:[%s3017_s20 + $0xa8] sm:$0xff]  ;;  %v393_v26 = vld [vmem:[%s3017_s20 + $0x30] sm:$0xff] }
  0x18   : > { %424 = vst.msk [vmem:[#allocation2 + $0x39] sm:$0xff] %vm384_vm0, %v392_v24  ;;  %440 = vst.msk [vmem:[#allocation2 + $0xb9] sm:$0xff] %vm384_vm0, %v408_v25  ;;  %v409_v28 = vld [vmem:[%s3017_s20 + $0xb0] sm:$0xff]  ;;  %v394_v29 = vld [vmem:[%s3017_s20 + $0x38] sm:$0xff] }
  0x19   : > { %425 = vst.msk [vmem:[#allocation2 + $0x41] sm:$0xff] %vm384_vm0, %v393_v26  ;;  %441 = vst.msk [vmem:[#allocation2 + $0xc1] sm:$0xff] %vm384_vm0, %v409_v28  ;;  %v410_v31 = vld [vmem:[%s3017_s20 + $0xb8] sm:$0xff]  ;;  %v395_v32 = vld [vmem:[%s3017_s20 + $0x40] sm:$0xff] }
  0x1a   : > { %426 = vst.msk [vmem:[#allocation2 + $0x49] sm:$0xff] %vm384_vm0, %v394_v29  ;;  %v1097_v33 = vld [vmem:[#allocation2 + $0x11] sm:$0xff]  ;;  %v1098_v34 = vld [vmem:[#allocation2 + $0x19] sm:$0xff]  ;;  %v1111_v35 = vld [vmem:[#allocation2 + $0x81] sm:$0xff] }
  0x1b   : > { %442 = vst.msk [vmem:[#allocation2 + $0xc9] sm:$0xff] %vm384_vm0, %v410_v31  ;;  %427 = vst.msk [vmem:[#allocation2 + $0x51] sm:$0xff] %vm384_vm0, %v395_v32  ;;  %v3066_v37 = vpack.c.bf16 %v1098_v34, %v1097_v33  ;;  %v1112_v38 = vld [vmem:[#allocation2 + $0x89] sm:$0xff]  ;;  %v1113_v39 = vld [vmem:[#allocation2 + $0x91] sm:$0xff] }
  0x1c   : > { %v1114_v40 = vld [vmem:[#allocation2 + $0x99] sm:$0xff]  ;;  %v1135_v44 = vpack.c.bf16 %v1112_v38, %v1111_v35  ;;  %v1225_v45 = vld [vmem:[#allocation2 + $0xa] sm:$0xff]  ;;  %v1240_v54 = vld [vmem:[#allocation2 + $0x82] sm:$0xff] }
  0x1d   : > { %v1241_v46 = vld [vmem:[#allocation2 + $0x8a] sm:$0xff]  ;;  %1161 = vrot.lane.b32.xlu1 %v3066_v37, %s2952_s21  ;;  %v3081_v50 = vpack.c.bf16 %v1114_v40, %v1113_v39  ;;  %v1321_v51 = vsel %vm3060_vm2, %v1225_v45, 0.0  ;;  %v3085_v52 = vld [vmem:[#allocation2 + $0x1a] sm:$0xff]  ;;  %v3090_v56 = vld [vmem:[#allocation2 + $0x12] sm:$0xff] }
  0x1e   : > { %1175 = vrot.lane.b32.xlu0 %v1135_v44, %s2952_s21  ;;  %v1352_v53 = vpack.c.bf16 %v1321_v51, %v1224_v30  ;;  %v1337_v55 = vsel %vm3068_vm3, %v1241_v46, 0.0  ;;  %v1323_v57 = vsel %vm3073_vm4, %v3085_v52, 0.0  ;;  %v3099_v59 = vld [vmem:[#allocation2 + $0x9a] sm:$0xff]  ;;  %v3106_v63 = vld [vmem:[#allocation2 + $0x10] sm:$0xff]  ;;  %v3135_v17 = vld [vmem:[#allocation2 + $0x28] sm:$0xff] }
  0x1f   : > { %v1360_v1 = vpack.c.bf16 %v1337_v55, %v1240_v54  ;;  %v1353_v3 = vpack.c.bf16 %v1323_v57, %v3090_v56  ;;  %v3112_v4 = vld [vmem:[#allocation2 + $0x92] sm:$0xff]  ;;  %v1339_v5 = vsel %vm3095_vm5, %v3099_v59, 0.0  ;;  %v1481_v7 = vsel %vm3102_vm6, %v3106_v63, 0.0  ;;  %v3128_v12 = vld [vmem:[#allocation2 + $0x20] sm:$0xff]  ;;  %v3149_v23 = vld [vmem:[#allocation2 + $0xa8] sm:$0xff] }
  0x20   : > { %v1450_v6 = vld [vmem:[#allocation2 + $0x18] sm:$0xff]  ;;  %v1465_v9 = vld [vmem:[#allocation2 + $0x90] sm:$0xff]  ;;  %v1361_v13 = vpack.c.bf16 %v1339_v5, %v3112_v4  ;;  %v1483_v18 = vsel %vm3124_vm8, %v3128_v12, 0.0  ;;  %v3144_v20 = vld [vmem:[#allocation2 + $0xa0] sm:$0xff]  ;;  %v1033_v44 = vsel %vm3124_vm8, %v3106_v63, 0.0  ;;  %v1788_v61 = vsel %vm3068_vm3, %v3099_v59, 0.0 }
  0x21   : > { %1177 = vrot.lane.b32.xlu1 %v3081_v50, %s2952_s21  ;;  %v1513_v14 = vpack.c.bf16 %v1450_v6, %v1481_v7  ;;  %v1466_v15 = vld [vmem:[#allocation2 + $0x98] sm:$0xff]  ;;  %v1497_v16 = vsel %vm3120_vm7, %v1465_v9, 0.0  ;;  %v1514_v22 = vpack.c.bf16 %v3135_v17, %v1483_v18  ;;  %v1499_v24 = vsel %vm3140_vm9, %v3144_v20, 0.0  ;;  %v411_v25 = vld [vmem:[%s3017_s20 + $0xc0] sm:$0xff]  ;;  %v396_v26 = vld [vmem:[%s3017_s20 + $0x48] sm:$0xff] }
  0x22   : > { %1384 = vrot.lane.b32.xlu0 %v1352_v53, %s2953_s22  ;;  %v1521_v21 = vpack.c.bf16 %v1466_v15, %v1497_v16  ;;  %443 = vst.msk [vmem:[#allocation2 + $0xd1] sm:$0xff] %vm384_vm0, %v411_v25  ;;  %428 = vst.msk [vmem:[#allocation2 + $0x59] sm:$0xff] %vm384_vm0, %v396_v26  ;;  %v412_v27 = vld [vmem:[%s3017_s20 + $0xc8] sm:$0xff]  ;;  %v1522_v28 = vpack.c.bf16 %v3149_v23, %v1499_v24  ;;  %v935_v30 = vld [vmem:[#allocation2] sm:$0xff]  ;;  %v1064_v48 = vpack.c.bf16 %v1450_v6, %v1033_v44 }
  0x23   : > { %v1612_v29 = vld [vmem:[#allocation2 + $0x21] sm:$0xff]  ;;  %444 = vst.msk [vmem:[#allocation2 + $0xd9] sm:$0xff] %vm384_vm0, %v412_v27  ;;  %v1613_v32 = vld [vmem:[#allocation2 + $0x29] sm:$0xff]  ;;  %v398_v38 = vld [vmem:[%s3017_s20 + $0x58] sm:$0xff]  ;;  %v1031_v40 = vsel %vm3102_vm6, %v935_v30, 0.0  ;;  %v1049_v49 = vsel %vm3140_vm9, %v1465_v9, 0.0 }
  0x24   : > { %v400_v31 = vld [vmem:[%s3017_s20 + $0x68] sm:$0xff]  ;;  %v397_v34 = vld [vmem:[%s3017_s20 + $0x50] sm:$0xff]  ;;  %v414_v39 = vld [vmem:[%s3017_s20 + $0xd8] sm:$0xff]  ;;  %430 = vst.msk [vmem:[#allocation2 + $0x69] sm:$0xff] %vm384_vm0, %v398_v38  ;;  %v3181_v45 = vpack.c.bf16 %v1613_v32, %v1612_v29  ;;  %v1772_v53 = vsel %vm3060_vm2, %v3085_v52, 0.0  ;;  %v1072_v54 = vpack.c.bf16 %v1466_v15, %v1049_v49  ;;  %v459_v18 = vadd.s32 32, %v3009_v2 }
  0x25   : > { %1400 = vrot.lane.b32.xlu1 %v1360_v1, %s2953_s22  ;;  %v936_v33 = vld [vmem:[#allocation2 + $0x8] sm:$0xff]  ;;  %432 = vst.msk [vmem:[#allocation2 + $0x79] sm:$0xff] %vm384_vm0, %v400_v31  ;;  %429 = vst.msk [vmem:[#allocation2 + $0x61] sm:$0xff] %vm384_vm0, %v397_v34  ;;  %v413_v35 = vld [vmem:[%s3017_s20 + $0xd0] sm:$0xff]  ;;  %v1803_v52 = vpack.c.bf16 %v1772_v53, %v3090_v56  ;;  %v1811_v56 = vpack.c.bf16 %v1788_v61, %v3112_v4  ;;  %v1932_v4 = vsel %vm3102_vm6, %v3128_v12, 0.0  ;;  %v477_v31 = vadd.s32 176, %v3009_v2 }
  0x26   : > { %1386 = vrot.lane.b32.xlu0 %v1353_v3, %s2953_s22  ;;  %445 = vst.msk [vmem:[#allocation2 + $0xe1] sm:$0xff] %vm384_vm0, %v413_v35  ;;  %446 = vst.msk [vmem:[#allocation2 + $0xe9] sm:$0xff] %vm384_vm0, %v414_v39  ;;  %v1628_v42 = vld [vmem:[#allocation2 + $0xa1] sm:$0xff]  ;;  %v1063_v43 = vpack.c.bf16 %v936_v33, %v1031_v40  ;;  %v1629_v46 = vld [vmem:[#allocation2 + $0xa9] sm:$0xff]  ;;  %v519_v24 = vand.u32 15, %v459_v18 }
  0x27   : > { %v399_v51 = vld [vmem:[%s3017_s20 + $0x60] sm:$0xff]  ;;  %v3191_v55 = vld [vmem:[#allocation2 + $0x2a] sm:$0xff]  ;;  %1080 = vst.msk [vmem:[#allocation3 + $0x8] sm:$0xff] %vm384_vm0, %v1064_v48  ;;  %v3198_v57 = vpack.c.bf16 %v1629_v46, %v1628_v42  ;;  %1088 = vst.msk [vmem:[#allocation3 + $0x48] sm:$0xff] %vm384_vm0, %v1072_v54  ;;  %v645_v53 = vand.u32 15, %v477_v31 }
  0x28   : > { %1079 = vst.msk [vmem:[#allocation3] sm:$0xff] %vm384_vm0, %v1063_v43  ;;  %431 = vst.msk [vmem:[#allocation2 + $0x71] sm:$0xff] %vm384_vm0, %v399_v51  ;;  %v1774_v0 = vsel %vm3073_vm4, %v3191_v55, 0.0  ;;  %v3217_v1 = vld [vmem:[#allocation2 + $0xaa] sm:$0xff]  ;;  %v415_v59 = vld [vmem:[%s3017_s20 + $0xe0] sm:$0xff]  ;;  %vm3275_vm10 = vcmp.ne.s32.totalorder %v519_v24, 0 }
  0x29   : > { %1402 = vrot.lane.b32.xlu1 %v1361_v13, %s2953_s22  ;;  %v3227_v6 = vld [vmem:[#allocation2 + $0xa2] sm:$0xff]  ;;  %v1790_v7 = vsel %vm3095_vm5, %v3217_v1, 0.0  ;;  %447 = vst.msk [vmem:[#allocation2 + $0xf1] sm:$0xff] %vm384_vm0, %v415_v59  ;;  %v3236_v9 = vld [vmem:[#allocation2 + $0x30] sm:$0xff]  ;;  %v1964_v13 = vpack.c.bf16 %v3135_v17, %v1932_v4  ;;  %v3246_v16 = vld [vmem:[#allocation2 + $0x38] sm:$0xff]  ;;  %v2223_v49 = vsel %vm3060_vm2, %v3191_v55, 0.0 }
  0x2a   : > { %1545 = vrot.lane.b32.xlu0 %v1513_v14, %s2954_s23  ;;  %v1812_v10 = vpack.c.bf16 %v1790_v7, %v3227_v6  ;;  %v1948_v14 = vsel %vm3120_vm7, %v3144_v20, 0.0  ;;  %v416_v15 = vld [vmem:[%s3017_s20 + $0xe8] sm:$0xff]  ;;  %v1934_v62 = vsel %vm3124_vm8, %v3236_v9, 0.0  ;;  %v3251_v12 = vld [vmem:[#allocation2 + $0xb0] sm:$0xff]  ;;  %v2922_v17 = vld [vmem:[%s4159_s3] sm:$0xff]   ;;  %v533_v51 = vand.u32 15, %v461_v19 }
  0x2b   : > { %448 = vst.msk [vmem:[#allocation2 + $0xf9] sm:$0xff] %vm384_vm0, %v416_v15  ;;  %v1972_v8 = vpack.c.bf16 %v3149_v23, %v1948_v14  ;;  %2835 = vmatprep.subr.bf16.mxu0 %v2922_v17  ;;  %v1965_v11 = vpack.c.bf16 %v3246_v16, %v1934_v62  ;;  %v3263_v20 = vld [vmem:[#allocation2 + $0xb8] sm:$0xff]  ;;  %2877 = vmatprep.subr.bf16.mxu1 %v2922_v17  ;;  %v2923_v23 = vld [vmem:[%s4159_s3 + $0x8] sm:$0xff]   ;;  %v939_v32 = vld [vmem:[#allocation2 + $0x20] sm:$0xff]  ;;  %v2239_v61 = vsel %vm3068_vm3, %v3217_v1, 0.0  ;;  %vm3319_vm13 = vcmp.ne.s32.totalorder %v645_v53, 0 }
  0x2c   : > { %v3200_v60 = vld [vmem:[#allocation2 + $0x80] sm:$0xff]  ;;  %2836 = vmatpush3.bf16.msra.mxu0 %v2922_v17  ;;  %2882 = vmatpush3.bf16.msra.mxu1 %v2922_v17  ;;  %v2063_v27 = vld [vmem:[#allocation2 + $0x31] sm:$0xff]  ;;  %v940_v35 = vld [vmem:[#allocation2 + $0x28] sm:$0xff]  ;;  %v1035_v38 = vsel %vm3275_vm10, %v939_v32, 0.0  ;;  %vm3315_vm12 = vcmp.ne.s32.totalorder %v533_v51, 0  ;;  %v2262_v14 = vpack.c.bf16 %v2239_v61, %v3227_v6 }
  0x2d   : > { %1561 = vrot.lane.b32.xlu1 %v1521_v21, %s2954_s23  ;;  %v1047_v63 = vsel %vm3120_vm7, %v3200_v60, 0.0  ;;  %v475_v21 = vadd.s32 160, %v3009_v2  ;;  %2837 = vmatprep.subr.bf16.mxu0 %v2923_v23  ;;  %v2924_v33 = vld [vmem:[%s4159_s3 + $0x10] sm:$0xff]   ;;  %v955_v34 = vld [vmem:[#allocation2 + $0xa0] sm:$0xff]  ;;  %v956_v39 = vld [vmem:[#allocation2 + $0xa8] sm:$0xff]  ;;  %v1065_v42 = vpack.c.bf16 %v940_v35, %v1035_v38 }
  0x2e   : > { %1547 = vrot.lane.b32.xlu0 %v1514_v22, %s2954_s23  ;;  %v1950_v22 = vsel %vm3140_vm9, %v3251_v12, 0.0  ;;  %2878 = vmatprep.subr.bf16.mxu1 %v2923_v23  ;;  %v2079_v46 = vld [vmem:[#allocation2 + $0xb1] sm:$0xff]  ;;  %v2080_v48 = vld [vmem:[#allocation2 + $0xb9] sm:$0xff]  ;;  %v1456_v51 = vld [vmem:[#allocation2 + $0x48] sm:$0xff] }
  0x2f   : > { %v631_v25 = vand.u32 15, %v475_v21  ;;  %v1973_v26 = vpack.c.bf16 %v3263_v20, %v1950_v22  ;;  %1081 = vst.msk [vmem:[#allocation3 + $0x10] sm:$0xff] %vm384_vm0, %v1065_v42  ;;  %v2925_v54 = vld [vmem:[%s4159_s3 + $0x18] sm:$0xff]   ;;  %v2926_v59 = vld [vmem:[%s4159_s3 + $0x20] ss:$0 sps:$4 sm:$0xff]   ;;  %v957_v41 = vld [vmem:[#allocation2 + $0xb0] sm:$0xff] }
  0x30   : > { %2838 = vmatpush3.bf16.msra.mxu0 %v2923_v23  ;;  %2883 = vmatpush3.bf16.msra.mxu1 %v2923_v23  ;;  %v942_v7 = vld [vmem:[#allocation2 + $0x38] sm:$0xff]  ;;  %v2454_v62 = vsel %vm2452_vm14, %v2926_v59, 0  ;;  %v417_v21 = vld [vmem:[%s3017_s20 + $0xf0] sm:$0xff]  ;;  %v476_v22 = vadd.s32 168, %v3009_v2  ;;  %v1455_v42 = vld [vmem:[#allocation2 + $0x40] sm:$0xff] }
  0x31   : > { %1563 = vrot.lane.b32.xlu1 %v1522_v28, %s2954_s23  ;;  %v2064_v28 = vld [vmem:[#allocation2 + $0x39] sm:$0xff]  ;;  %vm3279_vm11 = vcmp.ne.s32.totalorder %v631_v25, 0  ;;  %2839 = vmatprep.subr.bf16.mxu0 %v2924_v33  ;;  %449 = vst.msk [vmem:[#allocation2 + $0x101] sm:$0xff] %vm384_vm0, %v417_v21  ;;  %v462_v25 = vadd.s32 56, %v3009_v2  ;;  %v1472_v61 = vld [vmem:[#allocation2 + $0xc8] sm:$0xff]  ;;  %v3486_v29 = vld [vmem:[#allocation2 + $0xd0] sm:$0xff] }
  0x32   : > { %1674 = vrot.lane.b32.xlu0 %v3066_v37, %s2955_s24  ;;  %v3194_v37 = vld [vmem:[#allocation2 + $0x88] sm:$0xff]  ;;  %v1051_v40 = vsel %vm3279_vm11, %v955_v34, 0.0  ;;  %v3294_v44 = vpack.c.bf16 %v2064_v28, %v2063_v27  ;;  %2879 = vmatprep.subr.bf16.mxu1 %v2924_v33  ;;  %v3340_v17 = vld [vmem:[#allocation2 + $0x32] sm:$0xff]  ;;  %v638_v27 = vand.u32 15, %v476_v22  ;;  %v478_v28 = vadd.s32 184, %v3009_v2  ;;  %v1471_v53 = vld [vmem:[#allocation2 + $0xc0] sm:$0xff] }
  0x33   : > { %v1071_v3 = vpack.c.bf16 %v3194_v37, %v1047_v63  ;;  %v1073_v43 = vpack.c.bf16 %v956_v39, %v1051_v40  ;;  %v460_v63 = vadd.s32 40, %v3009_v2  ;;  %v3356_v23 = vld [vmem:[#allocation2 + $0xb2] sm:$0xff]  ;;  %v540_v31 = vand.u32 15, %v462_v25 }
  0x34   : > { %2840 = vmatpush3.bf16.msra.mxu0 %v2924_v33  ;;  %2884 = vmatpush3.bf16.msra.mxu1 %v2924_v33  ;;  %vm3373_vm1 = vcmp.ne.s32.totalorder %v638_v27, 15  ;;  %v652_v33 = vand.u32 15, %v478_v28  ;;  %v1485_v40 = vsel %vm3275_vm10, %v3236_v9, 0.0  ;;  %v1487_v9 = vsel %vm3315_vm12, %v1455_v42, 0.0  ;;  %v3474_v22 = vld [vmem:[#allocation2 + $0x50] sm:$0xff]  ;;  %v946_v32 = vld [vmem:[#allocation2 + $0x58] sm:$0xff] }
  0x35   : > { %1690 = vrot.lane.b32.xlu1 %v3081_v50, %s2955_s24  ;;  %v3212_v50 = vld [vmem:[#allocation2 + $0x22] sm:$0xff]  ;;  %1087 = vst.msk [vmem:[#allocation3 + $0x40] sm:$0xff] %vm384_vm0, %v1071_v3  ;;  %1089 = vst.msk [vmem:[#allocation3 + $0x50] sm:$0xff] %vm384_vm0, %v1073_v43  ;;  %2841 = vmatprep.subr.bf16.mxu0 %v2925_v54  ;;  %v526_v24 = vand.u32 15, %v460_v63  ;;  %vm3377_vm2 = vcmp.ne.s32.totalorder %v540_v31, 15  ;;  %v463_v27 = vadd.s32 64, %v3009_v2 }
  0x36   : > { %1676 = vrot.lane.b32.xlu0 %v3181_v45, %s2955_s24  ;;  %v1804_v5 = vpack.c.bf16 %v1774_v0, %v3212_v50  ;;  %v2254_v36 = vpack.c.bf16 %v2223_v49, %v3212_v50  ;;  %2880 = vmatprep.subr.bf16.mxu1 %v2925_v54  ;;  %vm3391_vm3 = vcmp.ne.s32.totalorder %v652_v33, 15  ;;  %v418_v49 = vld [vmem:[%s3017_s20 + $0xf8] sm:$0xff]  ;;  %v479_v28 = vadd.s32 192, %v3009_v2 }
  0x37   : > { %vm3362_vm15 = vcmp.ne.s32.totalorder %v526_v24, 15  ;;  %450 = vst.msk [vmem:[#allocation2 + $0x109] sm:$0xff] %vm384_vm0, %v418_v49  ;;  %v1954_v0 = vsel %vm3319_vm13, %v3486_v29, 0.0  ;;  %v465_v3 = vadd.s32 80, %v3009_v2 }
  0x38   : > { %2842 = vmatpush3.bf16.msra.mxu0 %v2925_v54  ;;  %2885 = vmatpush3.bf16.msra.mxu1 %v2925_v54  ;;  %v1325_v58 = vsel %vm3362_vm15, %v3191_v55, 0.0  ;;  %v1341_v55 = vsel %vm3373_vm1, %v3217_v1, 0.0  ;;  %v659_v33 = vand.u32 15, %v479_v28  ;;  %v3562_v28 = vld [vmem:[#allocation2 + $0xda] sm:$0xff] }
  0x39   : > { %1692 = vrot.lane.b32.xlu1 %v3198_v57, %s2955_s24  ;;  %2887 = vmatprep.subr.msk.bf16.mxu0 %vm2452_vm14, %v2926_v59  ;;  %v1362_v39 = vpack.c.bf16 %v1341_v55, %v3227_v6  ;;  %v1515_v6 = vpack.c.bf16 %v3246_v16, %v1485_v40  ;;  %v1516_v16 = vpack.c.bf16 %v1456_v51, %v1487_v9  ;;  %v2067_v55 = vld [vmem:[#allocation2 + $0x51] sm:$0xff]  ;;  %v943_v40 = vld [vmem:[#allocation2 + $0x40] sm:$0xff] }
  0x3a   : > { %1835 = vrot.lane.b32.xlu0 %v1803_v52, %s2956_s25  ;;  %v3306_v52 = vpack.c.bf16 %v2080_v48, %v2079_v46  ;;  %2888 = vmatprep.subr.msk.bf16.mxu1 %vm2452_vm14, %v2926_v59  ;;  %v1501_v46 = vsel %vm3279_vm11, %v3251_v12, 0.0  ;;  %v469_v48 = vadd.s32 112, %v3009_v2  ;;  %v1503_v12 = vsel %vm3319_vm13, %v1471_v53, 0.0 }
  0x3b   : > { %vm3505_vm7 = vcmp.ne.s32.totalorder %v659_v33, 0  ;;  %v3574_v33 = vld [vmem:[#allocation2 + $0xd2] sm:$0xff] }
  0x3c   : > { %2844 = vmatpush3.bf16.msra.mxu0 %v2454_v62  ;;  %2886 = vmatpush3.bf16.msra.mxu1 %v2454_v62  ;;  %v589_v54 = vand.u32 15, %v469_v48  ;;  %v3455_v62 = vld [vmem:[#allocation2 + $0x42] sm:$0xff] }
  0x3d   : > { %1851 = vrot.lane.b32.xlu1 %v1811_v56, %s2956_s25  ;;  %v941_v56 = vld [vmem:[#allocation2 + $0x30] sm:$0xff] }
  0x3e   : > { %1837 = vrot.lane.b32.xlu0 %v1804_v5, %s2956_s25  ;;  %v3326_v5 = vld [vmem:[#allocation2 + $0x3a] sm:$0xff]  ;;  %v1037_v4 = vsel %vm3315_vm12, %v941_v56, 0.0 }
  0x3f   : > { %v1066_v15 = vpack.c.bf16 %v942_v7, %v1037_v4  ;;  %v1327_v35 = vsel %vm3377_vm2, %v3326_v5, 0.0  ;;  %v1617_v7 = vld [vmem:[#allocation2 + $0x49] sm:$0xff] }
  0x41   : > { %1853 = vrot.lane.b32.xlu1 %v1812_v10, %s2956_s25  ;;  %v958_v10 = vld [vmem:[#allocation2 + $0xb8] sm:$0xff]  ;;  %1082 = vst.msk [vmem:[#allocation3 + $0x18] sm:$0xff] %vm384_vm0, %v1066_v15 }
  0x42   : > { %1996 = vrot.lane.b32.xlu0 %v1964_v13, %s2957_s28  ;;  %v1053_v13 = vsel %vm3319_vm13, %v957_v41, 0.0  ;;  %v1616_v41 = vld [vmem:[#allocation2 + $0x41] sm:$0xff] }
  0x43   : > { %v1074_v18 = vpack.c.bf16 %v958_v10, %v1053_v13  ;;  %v3438_v4 = vpack.c.bf16 %v1617_v7, %v1616_v41  ;;  %v1632_v10 = vld [vmem:[#allocation2 + $0xc1] sm:$0xff]  ;;  %v1633_v13 = vld [vmem:[#allocation2 + $0xc9] sm:$0xff] }
  0x45   : > { %2012 = vrot.lane.b32.xlu1 %v1972_v8, %s2957_s28  ;;  %v2225_v8 = vsel %vm3073_vm4, %v3326_v5, 0.0  ;;  %1090 = vst.msk [vmem:[#allocation3 + $0x58] sm:$0xff] %vm384_vm0, %v1074_v18  ;;  %vm3423_vm4 = vcmp.ne.s32.totalorder %v589_v54, 0  ;;  %v3460_v18 = vld [vmem:[#allocation2 + $0xca] sm:$0xff] }
  0x46   : > { %1998 = vrot.lane.b32.xlu0 %v1965_v11, %s2957_s28  ;;  %v3345_v11 = vld [vmem:[#allocation2 + $0xba] sm:$0xff]  ;;  %v2255_v47 = vpack.c.bf16 %v2225_v8, %v3340_v17  ;;  %v1495_v56 = vsel %vm3423_vm4, %v3200_v60, 0.0  ;;  %v3443_v60 = vld [vmem:[#allocation2 + $0x4a] sm:$0xff]  ;;  %v1794_v8 = vsel %vm3391_vm3, %v3460_v18, 0.0  ;;  %v2243_v19 = vsel %vm3373_vm1, %v3460_v18, 0.0 }
  0x47   : > { %v1343_v1 = vsel %vm3391_vm3, %v3345_v11, 0.0  ;;  %v3431_v59 = vpack.c.bf16 %v3194_v37, %v1495_v56  ;;  %v1776_v37 = vsel %vm3362_vm15, %v3326_v5, 0.0  ;;  %v1792_v15 = vsel %vm3373_vm1, %v3345_v11, 0.0  ;;  %v2083_v54 = vld [vmem:[#allocation2 + $0xd1] sm:$0xff] }
  0x48   : > { %v1363_v43 = vpack.c.bf16 %v1343_v1, %v3356_v23  ;;  %v1778_v5 = vsel %vm3377_vm2, %v3443_v60, 0.0  ;;  %v481_v1 = vadd.s32 208, %v3009_v2  ;;  %vm1722_vm1 = vcmask 326912  }
  0x49   : > { %2014 = vrot.lane.b32.xlu1 %v1973_v26, %s2957_s28  ;;  %v2241_v26 = vsel %vm3095_vm5, %v3345_v11, 0.0  ;;  %v1806_v21 = vpack.c.bf16 %v1778_v5, %v3455_v62  ;;  %v1936_v11 = vsel %vm3275_vm10, %v1455_v42, 0.0  ;;  %vm1207_vm5 = vcmask 130112   ;;  %v959_v42 = vld [vmem:[#allocation2 + $0xc0] sm:$0xff] }
  0x4a   : > { %2125 = vrot.lane.b32.xlu0 %v3181_v45, %s2958_s7  ;;  %v1966_v25 = vpack.c.bf16 %v1456_v51, %v1936_v11  ;;  %v1055_v48 = vsel %vm3505_vm7, %v959_v42, 0.0  ;;  %v464_v5 = vadd.s32 72, %v3009_v2  ;;  %vm4163_vm10 = vcmask 195712  }
  0x4d   : > { %2141 = vrot.lane.b32.xlu1 %v3198_v57, %s2958_s7 }
  0x4e   : > { %2127 = vrot.lane.b32.xlu0 %v3294_v44, %s2958_s7 }
  0x51   : > { %2143 = vrot.lane.b32.xlu1 %v3306_v52, %s2958_s7 }
  0x52   : > { %2286 = vrot.lane.b32.xlu0 %v2254_v36, %s2959_s12  ;;  %v1523_v36 = vpack.c.bf16 %v3263_v20, %v1501_v46  ;;  %v1524_v20 = vpack.c.bf16 %v1472_v61, %v1503_v12  ;;  %v960_v46 = vld [vmem:[#allocation2 + $0xc8] sm:$0xff]  ;;  %v673_v12 = vand.u32 15, %v481_v1 }
  0x53   : > { %v1075_v9 = vpack.c.bf16 %v960_v46, %v1055_v48 }
  0x54   : > { %vm3540_vm9 = vcmp.ne.s32.totalorder %v673_v12, 0 }
  0x55   : > { %2302 = vrot.lane.b32.xlu1 %v2262_v14, %s2959_s12  ;;  %v3447_v14 = vpack.c.bf16 %v1633_v13, %v1632_v10  ;;  %1091 = vst.msk [vmem:[#allocation3 + $0x60] sm:$0xff] %vm384_vm0, %v1075_v9  ;;  %v945_v13 = vld [vmem:[#allocation2 + $0x50] sm:$0xff]  ;;  %v1915_v10 = vld [vmem:[#allocation2 + $0x98] sm:$0xff] }
  0x56   : > { %1163 = vrot.lane.b32.xlu0 %v3181_v45, %s2952_s21  ;;  %v2263_v45 = vpack.c.bf16 %v2241_v26, %v3356_v23  ;;  %v1938_v26 = vsel %vm3315_vm12, %v3474_v22, 0.0  ;;  %vm4162_vm12 = vcmask 261312  }
  0x59   : > { %1179 = vrot.lane.b32.xlu1 %v3198_v57, %s2952_s21  ;;  %v1354_v57 = vpack.c.bf16 %v1325_v58, %v3212_v50  ;;  %v1355_v50 = vpack.c.bf16 %v1327_v35, %v3340_v17  ;;  %v547_v58 = vand.u32 15, %v463_v27  ;;  %v2068_v35 = vld [vmem:[#allocation2 + $0x59] sm:$0xff] }
  0x5a   : > { %2288 = vrot.lane.b32.xlu0 %v2255_v47, %s2959_s12  ;;  %v1952_v47 = vsel %vm3279_vm11, %v1471_v53, 0.0  ;;  %v3519_v53 = vpack.c.bf16 %v2068_v35, %v2067_v55 }
  0x5b   : > { %v1974_v31 = vpack.c.bf16 %v1472_v61, %v1952_v47  ;;  %vm3501_vm6 = vcmp.ne.s32.totalorder %v547_v58, 0  ;;  %v561_v61 = vand.u32 15, %v465_v3  ;;  %v466_v58 = vadd.s32 88, %v3009_v2 }
  0x5c   : > { %v482_v3 = vadd.s32 216, %v3009_v2  ;;  %v1489_v12 = vsel %vm3501_vm6, %v3474_v22, 0.0 }
  0x5d   : > { %2304 = vrot.lane.b32.xlu1 %v2263_v45, %s2959_s12  ;;  %v3493_v45 = vld [vmem:[#allocation2 + $0xd8] sm:$0xff]  ;;  %vm3536_vm8 = vcmp.ne.s32.totalorder %v561_v61, 0 }
  0x5e   : > { %1165 = vrot.lane.b32.xlu0 %v3294_v44, %s2952_s21  ;;  %v680_v46 = vand.u32 15, %v482_v3 }
  0x61   : > { %1181 = vrot.lane.b32.xlu1 %v3306_v52, %s2952_s21 }
  0x62   : > { %1388 = vrot.lane.b32.xlu0 %v1354_v57, %s2953_s22  ;;  %v1975_v57 = vpack.c.bf16 %v3493_v45, %v1954_v0  ;;  %v554_v0 = vand.u32 15, %v464_v5  ;;  %v3646_v5 = vld [vmem:[#allocation2 + $0xe0] sm:$0xff] }
  0x64   : > { %vm3581_vm11 = vcmp.ne.s32.totalorder %v554_v0, 15  ;;  %v1637_v0 = vld [vmem:[#allocation2 + $0xe9] sm:$0xff] }
  0x65   : > { %1404 = vrot.lane.b32.xlu1 %v1362_v39, %s2953_s22  ;;  %v1956_v39 = vsel %vm3505_vm7, %v3646_v5, 0.0 }
  0x66   : > { %1390 = vrot.lane.b32.xlu0 %v1355_v50, %s2953_s22 }
  0x69   : > { %1406 = vrot.lane.b32.xlu1 %v1363_v43, %s2953_s22  ;;  %v944_v43 = vld [vmem:[#allocation2 + $0x48] sm:$0xff] }
  0x6a   : > { %1549 = vrot.lane.b32.xlu0 %v1515_v6, %s2954_s23  ;;  %v1039_v6 = vsel %vm3501_vm6, %v943_v40, 0.0 }
  0x6b   : > { %v1067_v51 = vpack.c.bf16 %v944_v43, %v1039_v6  ;;  %v1329_v43 = vsel %vm3581_vm11, %v3443_v60, 0.0 }
  0x6d   : > { %1565 = vrot.lane.b32.xlu1 %v1523_v36, %s2954_s23  ;;  %v2084_v36 = vld [vmem:[#allocation2 + $0xd9] sm:$0xff]  ;;  %1083 = vst.msk [vmem:[#allocation3 + $0x20] sm:$0xff] %vm384_vm0, %v1067_v51 }
  0x6e   : > { %1551 = vrot.lane.b32.xlu0 %v1516_v16, %s2954_s23  ;;  %v2227_v16 = vsel %vm3362_vm15, %v3443_v60, 0.0  ;;  %v3528_v56 = vpack.c.bf16 %v2084_v36, %v2083_v54  ;;  %v1356_v60 = vpack.c.bf16 %v1329_v43, %v3455_v62  ;;  %vm3613_vm15 = vcmp.ne.s32.totalorder %v680_v46, 15 }
  0x71   : > { %1567 = vrot.lane.b32.xlu1 %v1524_v20, %s2954_s23  ;;  %v2256_v20 = vpack.c.bf16 %v2227_v16, %v3455_v62  ;;  %v1347_v16 = vsel %vm3613_vm15, %v3562_v28, 0.0 }
  0x72   : > { %1678 = vrot.lane.b32.xlu0 %v3294_v44, %s2955_s24  ;;  %v1805_v44 = vpack.c.bf16 %v1776_v37, %v3340_v17  ;;  %v3467_v17 = vld [vmem:[#allocation2 + $0xc2] sm:$0xff]  ;;  %v961_v37 = vld [vmem:[#allocation2 + $0xd0] sm:$0xff] }
  0x73   : > { %v1814_v24 = vpack.c.bf16 %v1794_v8, %v3467_v17  ;;  %v1057_v8 = vsel %vm3540_vm9, %v961_v37, 0.0  ;;  %v2264_v11 = vpack.c.bf16 %v2243_v19, %v3467_v17  ;;  %v3631_v19 = vld [vmem:[#allocation2 + $0x60] sm:$0xff]  ;;  %v3641_v37 = vld [vmem:[#allocation2 + $0x68] sm:$0xff] }
  0x75   : > { %1694 = vrot.lane.b32.xlu1 %v3306_v52, %s2955_s24  ;;  %v1813_v52 = vpack.c.bf16 %v1792_v15, %v3356_v23  ;;  %v3481_v23 = vld [vmem:[#allocation2 + $0x58] sm:$0xff] }
  0x76   : > { %1680 = vrot.lane.b32.xlu0 %v3438_v4, %s2955_s24  ;;  %v1967_v30 = vpack.c.bf16 %v3481_v23, %v1938_v26  ;;  %v3545_v15 = vld [vmem:[#allocation2 + $0x5a] sm:$0xff]  ;;  %v3557_v26 = vld [vmem:[#allocation2 + $0x52] sm:$0xff] }
  0x77   : > { %v2229_v27 = vsel %vm3377_vm2, %v3545_v15, 0.0  ;;  %vm4161_vm2 = vcmask 392512  }
  0x78   : > { %v2257_v34 = vpack.c.bf16 %v2229_v27, %v3557_v26 }
  0x79   : > { %1696 = vrot.lane.b32.xlu1 %v3447_v14, %s2955_s24 }
  0x7a   : > { %1839 = vrot.lane.b32.xlu0 %v1805_v44, %s2956_s25 }
  0x7d   : > { %1855 = vrot.lane.b32.xlu1 %v1813_v52, %s2956_s25  ;;  %v1041_v52 = vsel %vm3536_vm8, %v945_v13, 0.0  ;;  %v1505_v13 = vsel %vm3505_vm7, %v3486_v29, 0.0 }
  0x7e   : > { %1841 = vrot.lane.b32.xlu0 %v1806_v21, %s2956_s25  ;;  %v962_v21 = vld [vmem:[#allocation2 + $0xd8] sm:$0xff] }
  0x81   : > { %1857 = vrot.lane.b32.xlu1 %v1814_v24, %s2956_s25  ;;  %v1068_v24 = vpack.c.bf16 %v946_v32, %v1041_v52  ;;  %v3654_v52 = vld [vmem:[#allocation2 + $0xe8] sm:$0xff] }
  0x82   : > { %2000 = vrot.lane.b32.xlu0 %v1966_v25, %s2957_s28  ;;  %v1076_v25 = vpack.c.bf16 %v962_v21, %v1057_v8  ;;  %v1507_v21 = vsel %vm3540_vm9, %v3646_v5, 0.0  ;;  %v1976_v50 = vpack.c.bf16 %v3654_v52, %v1956_v39 }
  0x83   : > { %v1160_v49 = vpop.permute.xlu0 %1159  ;;  %1084 = vst.msk [vmem:[#allocation3 + $0x28] sm:$0xff] %vm384_vm0, %v1068_v24 }
  0x84   : > { %1208 = vst.msk [vmem:[#allocation3] sm:$0xff] %vm1207_vm5, %v1160_v49 }
  0x85   : > { %2016 = vrot.lane.b32.xlu1 %v1974_v31, %s2957_s28  ;;  %v480_v31 = vadd.s32 200, %v3009_v2  ;;  %1092 = vst.msk [vmem:[#allocation3 + $0x68] sm:$0xff] %vm384_vm0, %v1076_v25  ;;  %v1620_v25 = vld [vmem:[#allocation2 + $0x61] sm:$0xff] }
  0x86   : > { %2002 = vrot.lane.b32.xlu0 %v1967_v30, %s2957_s28 }
  0x87   : > { %v666_v35 = vand.u32 15, %v480_v31 }
  0x89   : > { %2018 = vrot.lane.b32.xlu1 %v1975_v57, %s2957_s28  ;;  %v2245_v57 = vsel %vm3391_vm3, %v3562_v28, 0.0  ;;  %vm3593_vm13 = vcmp.ne.s32.totalorder %v666_v35, 15  ;;  %vm2044_vm3 = vcmask 458112  }
  0x8a   : > { %2129 = vrot.lane.b32.xlu0 %v3438_v4, %s2958_s7  ;;  %v2265_v38 = vpack.c.bf16 %v2245_v57, %v3574_v33  ;;  %v1345_v49 = vsel %vm3593_vm13, %v3460_v18, 0.0 }
  0x8b   : > { %v1364_v62 = vpack.c.bf16 %v1345_v49, %v3467_v17  ;;  %v1365_v17 = vpack.c.bf16 %v1347_v16, %v3574_v33  ;;  %v467_v16 = vadd.s32 96, %v3009_v2 }
  0x8d   : > { %2145 = vrot.lane.b32.xlu1 %v3447_v14, %s2958_s7 }
  0x8e   : > { %2131 = vrot.lane.b32.xlu0 %v3519_v53, %s2958_s7 }
  0x8f   : > { %v1162_v41 = vpop.permute.xlu1 %1161 }
  0x90   : > { %1209 = vst.msk [vmem:[#allocation3 + $0x8] sm:$0xff] %vm1207_vm5, %v1162_v41  ;;  %v1176_v44 = vpop.permute.xlu0 %1175  ;;  %v1517_v41 = vpack.c.bf16 %v3481_v23, %v1489_v12  ;;  %v1525_v23 = vpack.c.bf16 %v3493_v45, %v1505_v13  ;;  %v1526_v45 = vpack.c.bf16 %v3654_v52, %v1507_v21  ;;  %v947_v52 = vld [vmem:[#allocation2 + $0x60] sm:$0xff] }
  0x91   : > { %1216 = vst.msk [vmem:[#allocation3 + $0x40] sm:$0xff] %vm1207_vm5, %v1176_v44  ;;  %2147 = vrot.lane.b32.xlu1 %v3528_v56, %s2958_s7  ;;  %v1491_v44 = vsel %vm3536_vm8, %v3631_v19, 0.0  ;;  %v963_v21 = vld [vmem:[#allocation2 + $0xe0] sm:$0xff] }
  0x92   : > { %2290 = vrot.lane.b32.xlu0 %v2256_v20, %s2959_s12  ;;  %v1518_v29 = vpack.c.bf16 %v3641_v37, %v1491_v44  ;;  %v2071_v44 = vld [vmem:[#allocation2 + $0x71] sm:$0xff] }
  0x93   : > { %v1178_v47 = vpop.permute.xlu1 %1177 }
  0x94   : > { %1217 = vst.msk [vmem:[#allocation3 + $0x48] sm:$0xff] %vm1207_vm5, %v1178_v47  ;;  %v1385_v30 = vpop.permute.xlu0 %1384  ;;  %v1621_v47 = vld [vmem:[#allocation2 + $0x69] sm:$0xff] }
  0x95   : > { %1433 = vst.msk [vmem:[#allocation3] sm:$0xff] %vm4163_vm10, %v1385_v30  ;;  %2306 = vrot.lane.b32.xlu1 %v2264_v11, %s2959_s12  ;;  %v3669_v31 = vpack.c.bf16 %v1621_v47, %v1620_v25  ;;  %v1636_v30 = vld [vmem:[#allocation2 + $0xe1] sm:$0xff] }
  0x96   : > { %1167 = vrot.lane.b32.xlu0 %v3438_v4, %s2952_s21  ;;  %v568_v4 = vand.u32 15, %v466_v58 }
  0x97   : > { %v1401_v55 = vpop.permute.xlu1 %1400 }
  0x98   : > { %1441 = vst.msk [vmem:[#allocation3 + $0x40] sm:$0xff] %vm4163_vm10, %v1401_v55  ;;  %v1387_v1 = vpop.permute.xlu0 %1386  ;;  %vm3598_vm14 = vcmp.ne.s32.totalorder %v568_v4, 15  ;;  %v3675_v55 = vld [vmem:[#allocation2 + $0x6a] sm:$0xff] }
  0x99   : > { %1434 = vst.msk [vmem:[#allocation3 + $0x8] sm:$0xff] %vm4163_vm10, %v1387_v1  ;;  %1183 = vrot.lane.b32.xlu1 %v3447_v14, %s2952_s21  ;;  %v1331_v9 = vsel %vm3598_vm14, %v3545_v15, 0.0  ;;  %v3688_v1 = vld [vmem:[#allocation2 + $0x62] sm:$0xff]  ;;  %v1782_v4 = vsel %vm3598_vm14, %v3675_v55, 0.0 }
  0x9a   : > { %2292 = vrot.lane.b32.xlu0 %v2257_v34, %s2959_s12  ;;  %v1357_v18 = vpack.c.bf16 %v1331_v9, %v3557_v26  ;;  %v1780_v34 = vsel %vm3581_vm11, %v3545_v15, 0.0  ;;  %v1796_v15 = vsel %vm3593_vm13, %v3562_v28, 0.0  ;;  %v1808_v28 = vpack.c.bf16 %v1782_v4, %v3688_v1 }
  0x9b   : > { %v1403_v42 = vpop.permute.xlu1 %1402  ;;  %v1807_v35 = vpack.c.bf16 %v1780_v34, %v3557_v26  ;;  %v1815_v26 = vpack.c.bf16 %v1796_v15, %v3574_v33  ;;  %v3711_v33 = vld [vmem:[#allocation2 + $0x70] sm:$0xff] }
  0x9c   : > { %1442 = vst.msk [vmem:[#allocation3 + $0x48] sm:$0xff] %vm4163_vm10, %v1403_v42  ;;  %v1546_v48 = vpop.permute.xlu0 %1545  ;;  %v3702_v42 = vld [vmem:[#allocation2 + $0xe2] sm:$0xff]  ;;  %v1045_v6 = vsel %vm3423_vm4, %v3711_v33, 0.0 }
  0x9d   : > { %1594 = vst.msk [vmem:[#allocation3] sm:$0xff] %vm4162_vm12, %v1546_v48  ;;  %2308 = vrot.lane.b32.xlu1 %v2265_v38, %s2959_s12  ;;  %v3693_v38 = vld [vmem:[#allocation2 + $0xea] sm:$0xff]  ;;  %v1940_v48 = vsel %vm3501_vm6, %v3631_v19, 0.0  ;;  %vm2334_vm6 = vcmask 589312  }
  0x9e   : > { %1169 = vrot.lane.b32.xlu0 %v3519_v53, %s2952_s21  ;;  %v1798_v43 = vsel %vm3613_vm15, %v3693_v38, 0.0 }
  0x9f   : > { %v1562_v51 = vpop.permute.xlu1 %1561  ;;  %v1816_v49 = vpack.c.bf16 %v1798_v43, %v3702_v42 }
  0xa0   : > { %1602 = vst.msk [vmem:[#allocation3 + $0x40] sm:$0xff] %vm4162_vm12, %v1562_v51  ;;  %v1548_v36 = vpop.permute.xlu0 %1547  ;;  %v1968_v51 = vpack.c.bf16 %v3641_v37, %v1940_v48  ;;  %v3790_v48 = vld [vmem:[#allocation2 + $0x7a] sm:$0xff] }
  0xa1   : > { %1595 = vst.msk [vmem:[#allocation3 + $0x8] sm:$0xff] %vm4162_vm12, %v1548_v36  ;;  %1185 = vrot.lane.b32.xlu1 %v3528_v56, %s2952_s21  ;;  %v3721_v36 = vld [vmem:[#allocation2 + $0x78] sm:$0xff] }
  0xa2   : > { %1392 = vrot.lane.b32.xlu0 %v1356_v60, %s2953_s22  ;;  %v1070_v39 = vpack.c.bf16 %v3721_v36, %v1045_v6  ;;  %v1624_v6 = vld [vmem:[#allocation2 + $0x81] sm:$0xff] }
  0xa3   : > { %v1564_v61 = vpop.permute.xlu1 %1563 }
  0xa4   : > { %1603 = vst.msk [vmem:[#allocation3 + $0x48] sm:$0xff] %vm4162_vm12, %v1564_v61  ;;  %v1675_v20 = vpop.permute.xlu0 %1674  ;;  %v483_v61 = vadd.s32 224, %v3009_v2 }
  0xa5   : > { %1723 = vst.msk [vmem:[#allocation3] sm:$0xff] %vm1722_vm1, %v1675_v20  ;;  %1408 = vrot.lane.b32.xlu1 %v1364_v62, %s2953_s22  ;;  %v1942_v62 = vsel %vm3536_vm8, %v3711_v33, 0.0  ;;  %v3736_v20 = vld [vmem:[#allocation2 + $0xf8] sm:$0xff] }
  0xa6   : > { %1394 = vrot.lane.b32.xlu0 %v1357_v18, %s2953_s22  ;;  %v3726_v18 = vld [vmem:[#allocation2 + $0xf0] sm:$0xff]  ;;  %v1969_v7 = vpack.c.bf16 %v3721_v36, %v1942_v62  ;;  %v687_v13 = vand.u32 15, %v483_v61  ;;  %v2233_v61 = vsel %vm3598_vm14, %v3790_v48, 0.0  ;;  %1086 = vst.msk [vmem:[#allocation3 + $0x38] sm:$0xff] %vm384_vm0, %v1070_v39 }
  0xa7   : > { %v1691_v22 = vpop.permute.xlu1 %1690  ;;  %v1958_v19 = vsel %vm3540_vm9, %v3726_v18, 0.0  ;;  %vm4164_vm9 = vcmask 588800  }
  0xa8   : > { %1731 = vst.msk [vmem:[#allocation3 + $0x40] sm:$0xff] %vm1722_vm1, %v1691_v22  ;;  %v1677_v32 = vpop.permute.xlu0 %1676  ;;  %v1977_v37 = vpack.c.bf16 %v3736_v20, %v1958_v19  ;;  %vm3750_vm8 = vcmp.ne.s32.totalorder %v687_v13, 0  ;;  %v3824_v13 = vld [vmem:[#allocation2 + $0xf2] sm:$0xff] }
  0xa9   : > { %1724 = vst.msk [vmem:[#allocation3 + $0x8] sm:$0xff] %vm1722_vm1, %v1677_v32  ;;  %1410 = vrot.lane.b32.xlu1 %v1365_v17, %s2953_s22  ;;  %v2072_v32 = vld [vmem:[#allocation2 + $0x79] sm:$0xff]  ;;  %v1059_v25 = vsel %vm3750_vm8, %v963_v21, 0.0 }
  0xaa   : > { %1553 = vrot.lane.b32.xlu0 %v1517_v41, %s2954_s23  ;;  %v575_v41 = vand.u32 15, %v467_v16  ;;  %v3806_v16 = vld [vmem:[#allocation2 + $0x72] sm:$0xff] }
  0xab   : > { %v1693_v8 = vpop.permute.xlu1 %1692  ;;  %v2259_v14 = vpack.c.bf16 %v2233_v61, %v3806_v16 }
  0xac   : > { %1732 = vst.msk [vmem:[#allocation3 + $0x48] sm:$0xff] %vm1722_vm1, %v1693_v8  ;;  %v1836_v11 = vpop.permute.xlu0 %1835  ;;  %vm3746_vm7 = vcmp.ne.s32.totalorder %v575_v41, 0  ;;  %v470_v41 = vadd.s32 120, %v3009_v2 }
  0xad   : > { %1884 = vst.msk [vmem:[#allocation3] sm:$0xff] %vm4161_vm2, %v1836_v11  ;;  %1569 = vrot.lane.b32.xlu1 %v1525_v23, %s2954_s23  ;;  %v948_v11 = vld [vmem:[#allocation2 + $0x68] sm:$0xff]  ;;  %v1931_v23 = vld [vmem:[#allocation2 + $0x118] sm:$0xff] }
  0xae   : > { %1555 = vrot.lane.b32.xlu0 %v1518_v29, %s2954_s23  ;;  %v485_v29 = vadd.s32 240, %v3009_v2 }
  0xaf   : > { %v1852_v24 = vpop.permute.xlu1 %1851 }
  0xb0   : > { %1892 = vst.msk [vmem:[#allocation3 + $0x40] sm:$0xff] %vm4161_vm2, %v1852_v24  ;;  %v1838_v27 = vpop.permute.xlu0 %1837  ;;  %v964_v24 = vld [vmem:[#allocation2 + $0xe8] sm:$0xff] }
  0xb1   : > { %1885 = vst.msk [vmem:[#allocation3 + $0x8] sm:$0xff] %vm4161_vm2, %v1838_v27  ;;  %1571 = vrot.lane.b32.xlu1 %v1526_v45, %s2954_s23  ;;  %v1043_v45 = vsel %vm3746_vm7, %v947_v52, 0.0  ;;  %v1077_v27 = vpack.c.bf16 %v964_v24, %v1059_v25  ;;  %v596_v52 = vand.u32 15, %v470_v41  ;;  %v3932_v41 = vld [vmem:[#allocation2 + $0x82] sm:$0xff] }
  0xb2   : > { %1682 = vrot.lane.b32.xlu0 %v3519_v53, %s2955_s24  ;;  %v3680_v53 = vpack.c.bf16 %v1637_v0, %v1636_v30  ;;  %v1069_v47 = vpack.c.bf16 %v948_v11, %v1043_v45  ;;  %v3764_v30 = vpack.c.bf16 %v2072_v32, %v2071_v44  ;;  %v2087_v0 = vld [vmem:[#allocation2 + $0xf1] sm:$0xff]  ;;  %v486_v32 = vadd.s32 248, %v3009_v2 }
  0xb3   : > { %v1854_v58 = vpop.permute.xlu1 %1853  ;;  %1093 = vst.msk [vmem:[#allocation3 + $0x70] sm:$0xff] %vm384_vm0, %v1077_v27  ;;  %vm3849_vm14 = vcmp.ne.s32.totalorder %v596_v52, 15 }
  0xb4   : > { %1893 = vst.msk [vmem:[#allocation3 + $0x48] sm:$0xff] %vm4161_vm2, %v1854_v58  ;;  %v1997_v57 = vpop.permute.xlu0 %1996  ;;  %vm2173_vm2 = vcmask 523712   ;;  %v2088_v58 = vld [vmem:[#allocation2 + $0xf9] sm:$0xff]  ;;  %v708_v11 = vand.u32 15, %v486_v32 }
  0xb5   : > { %2045 = vst.msk [vmem:[#allocation3] sm:$0xff] %vm2044_vm3, %v1997_v57  ;;  %1698 = vrot.lane.b32.xlu1 %v3528_v56, %s2955_s24  ;;  %v2231_v57 = vsel %vm3581_vm11, %v3675_v55, 0.0  ;;  %v3776_v4 = vpack.c.bf16 %v2088_v58, %v2087_v0 }
  0xb6   : > { %1684 = vrot.lane.b32.xlu0 %v3669_v31, %s2955_s24  ;;  %1085 = vst.msk [vmem:[#allocation3 + $0x30] sm:$0xff] %vm384_vm0, %v1069_v47  ;;  %v2258_v40 = vpack.c.bf16 %v2231_v57, %v3688_v1  ;;  %v1335_v47 = vsel %vm3849_vm14, %v3790_v48, 0.0  ;;  %v1493_v57 = vsel %vm3746_vm7, %v3711_v33, 0.0 }
  0xb7   : > { %v2013_v3 = vpop.permute.xlu1 %2012 }
  0xb8   : > { %2053 = vst.msk [vmem:[#allocation3 + $0x40] sm:$0xff] %vm2044_vm3, %v2013_v3  ;;  %v1999_v56 = vpop.permute.xlu0 %1998 }
  0xb9   : > { %2046 = vst.msk [vmem:[#allocation3 + $0x8] sm:$0xff] %vm2044_vm3, %v1999_v56  ;;  %1700 = vrot.lane.b32.xlu1 %v3680_v53, %s2955_s24  ;;  %v2247_v56 = vsel %vm3593_vm13, %v3693_v38, 0.0 }
  0xba   : > { %1843 = vrot.lane.b32.xlu0 %v1807_v35, %s2956_s25  ;;  %v701_v35 = vand.u32 15, %v485_v29 }
  0xbb   : > { %v2015_v46 = vpop.permute.xlu1 %2014 }
  0xbc   : > { %2054 = vst.msk [vmem:[#allocation3 + $0x48] sm:$0xff] %vm2044_vm3, %v2015_v46  ;;  %v2126_v60 = vpop.permute.xlu0 %2125  ;;  %vm3784_vm11 = vcmp.ne.s32.totalorder %v701_v35, 0 }
  0xbd   : > { %2174 = vst.msk [vmem:[#allocation3] sm:$0xff] %vm2173_vm2, %v2126_v60  ;;  %1859 = vrot.lane.b32.xlu1 %v1815_v26, %s2956_s25  ;;  %v468_v60 = vadd.s32 104, %v3009_v2 }
  0xbe   : > { %1845 = vrot.lane.b32.xlu0 %v1808_v28, %s2956_s25 }
  0xbf   : > { %v2142_v9 = vpop.permute.xlu1 %2141 }
  0xc0   : > { %2182 = vst.msk [vmem:[#allocation3 + $0x40] sm:$0xff] %vm2173_vm2, %v2142_v9  ;;  %v2128_v12 = vpop.permute.xlu0 %2127 }
  0xc1   : > { %2175 = vst.msk [vmem:[#allocation3 + $0x8] sm:$0xff] %vm2173_vm2, %v2128_v12  ;;  %1861 = vrot.lane.b32.xlu1 %v1816_v49, %s2956_s25  ;;  %v1061_v49 = vsel %vm3784_vm11, %v3726_v18, 0.0  ;;  %v3811_v12 = vld [vmem:[#allocation2 + $0xfa] sm:$0xff] }
  0xc2   : > { %2004 = vrot.lane.b32.xlu0 %v1968_v51, %s2957_s28  ;;  %v2266_v51 = vpack.c.bf16 %v2247_v56, %v3702_v42  ;;  %v1078_v9 = vpack.c.bf16 %v3736_v20, %v1061_v49  ;;  %v3890_v56 = vld [vmem:[#allocation2 + $0x100] sm:$0xff]  ;;  %v1625_v49 = vld [vmem:[#allocation2 + $0x89] sm:$0xff] }
  0xc3   : > { %v2144_v17 = vpop.permute.xlu1 %2143  ;;  %v3913_v39 = vpack.c.bf16 %v1625_v49, %v1624_v6  ;;  %v2221_v49 = vld [vmem:[#allocation2 + $0x11a] sm:$0xff] }
  0xc4   : > { %2183 = vst.msk [vmem:[#allocation3 + $0x48] sm:$0xff] %vm2173_vm2, %v2144_v17  ;;  %v2287_v22 = vpop.permute.xlu0 %2286  ;;  %v582_v17 = vand.u32 15, %v468_v60 }
  0xc5   : > { %2335 = vst.msk [vmem:[#allocation3] sm:$0xff] %vm2334_vm6, %v2287_v22  ;;  %2020 = vrot.lane.b32.xlu1 %v1976_v50, %s2957_s28  ;;  %v484_v50 = vadd.s32 232, %v3009_v2  ;;  %v2249_v22 = vsel %vm3613_vm15, %v3811_v12, 0.0  ;;  %vm3864_vm15 = vcmp.ne.s32.totalorder %v708_v11, 15  ;;  %v1960_v11 = vsel %vm3750_vm8, %v3890_v56, 0.0 }
  0xc6   : > { %2006 = vrot.lane.b32.xlu0 %v1969_v7, %s2957_s28  ;;  %1094 = vst.msk [vmem:[#allocation3 + $0x78] sm:$0xff] %vm384_vm0, %v1078_v9  ;;  %vm3832_vm0 = vcmp.ne.s32.totalorder %v582_v17, 15  ;;  %v2267_v54 = vpack.c.bf16 %v2249_v22, %v3824_v13  ;;  %v1351_v58 = vsel %vm3864_vm15, %v3811_v12, 0.0  ;;  %v1640_v9 = vld [vmem:[#allocation2 + $0x101] sm:$0xff]  ;;  %v3937_v22 = vld [vmem:[#allocation2 + $0x10a] sm:$0xff]  ;;  %v2253_v24 = vsel %vm3864_vm15, %v2221_v49, 0.0 }
  0xc7   : > { %v2303_v5 = vpop.permute.xlu1 %2302  ;;  %v1333_v21 = vsel %vm3832_vm0, %v3675_v55, 0.0 }
  0xc8   : > { %2343 = vst.msk [vmem:[#allocation3 + $0x40] sm:$0xff] %vm2334_vm6, %v2303_v5  ;;  %v1164_v8 = vpop.permute.xlu0 %1163  ;;  %v694_v5 = vand.u32 15, %v484_v50  ;;  %v1358_v55 = vpack.c.bf16 %v1333_v21, %v3688_v1 }
  0xc9   : > { %1210 = vst.msk [vmem:[#allocation3 + $0x10] sm:$0xff] %vm1207_vm5, %v1164_v8  ;;  %2022 = vrot.lane.b32.xlu1 %v1977_v37, %s2957_s28 }
  0xca   : > { %2133 = vrot.lane.b32.xlu0 %v3669_v31, %s2958_s7  ;;  %vm3844_vm13 = vcmp.ne.s32.totalorder %v694_v5, 15  ;;  %v1802_v5 = vsel %vm3864_vm15, %v3937_v22, 0.0 }
  0xcb   : > { %v1180_v34 = vpop.permute.xlu1 %1179 }
  0xcc   : > { %1218 = vst.msk [vmem:[#allocation3 + $0x50] sm:$0xff] %vm1207_vm5, %v1180_v34  ;;  %v2289_v15 = vpop.permute.xlu0 %2288  ;;  %v2351_v3 = vld [vmem:[#allocation3] sm:$0xff] }
  0xcd   : > { %2336 = vst.msk [vmem:[#allocation3 + $0x8] sm:$0xff] %vm2334_vm6, %v2289_v15  ;;  %2149 = vrot.lane.b32.xlu1 %v3680_v53, %s2958_s7  ;;  %2845 = vmatprep.mubr.msk.bf16.mxu0 %vm4164_vm9, %v2351_v3  ;;  %v1519_v15 = vpack.c.bf16 %v3721_v36, %v1493_v57  ;;  %v1509_v3 = vsel %vm3750_vm8, %v3726_v18, 0.0  ;;  %v1511_v36 = vsel %vm3784_vm11, %v3890_v56, 0.0  ;;  %v2075_v57 = vld [vmem:[#allocation2 + $0x91] sm:$0xff] }
  0xce   : > { %2135 = vrot.lane.b32.xlu0 %v3764_v30, %s2958_s7 }
  0xcf   : > { %v2305_v26 = vpop.permute.xlu1 %2304  ;;  %v2359_v28 = vld [vmem:[#allocation3 + $0x40] sm:$0xff] }
  0xd0   : > { %2344 = vst.msk [vmem:[#allocation3 + $0x48] sm:$0xff] %vm2334_vm6, %v2305_v26  ;;  %v1166_v46 = vpop.permute.xlu0 %1165  ;;  %2861 = vmatprep.mubr.msk.bf16.mxu1 %vm4164_vm9, %v2359_v28  ;;  %v1527_v26 = vpack.c.bf16 %v3736_v20, %v1509_v3  ;;  %v3897_v28 = vld [vmem:[#allocation2 + $0x108] sm:$0xff]  ;;  %v2092_v3 = vld [vmem:[#allocation2 + $0x119] sm:$0xff] }
  0xd1   : > { %1211 = vst.msk [vmem:[#allocation3 + $0x18] sm:$0xff] %vm1207_vm5, %v1166_v46  ;;  %2151 = vrot.lane.b32.xlu1 %v3776_v4, %s2958_s7  ;;  %v1528_v60 = vpack.c.bf16 %v3897_v28, %v1511_v36 }
  0xd2   : > { %2294 = vrot.lane.b32.xlu0 %v2258_v40, %s2959_s12 }
  0xd3   : > { %v1182_v62 = vpop.permute.xlu1 %1181 }
  0xd4   : > { %1219 = vst.msk [vmem:[#allocation3 + $0x58] sm:$0xff] %vm1207_vm5, %v1182_v62  ;;  %v1389_v7 = vpop.permute.xlu0 %1388  ;;  %v2352_v19 = vld [vmem:[#allocation3 + $0x8] sm:$0xff] }
  0xd5   : > { %1435 = vst.msk [vmem:[#allocation3 + $0x10] sm:$0xff] %vm4163_vm10, %v1389_v7  ;;  %2310 = vrot.lane.b32.xlu1 %v2266_v51, %s2959_s12  ;;  %2846 = vmatmul.mubr.msk.bf16.vlgmr.msra.gmra.mrb[0].mxu0 %vm4164_vm9, %v2352_v19  ;;  %v1641_v62 = vld [vmem:[#allocation2 + $0x109] sm:$0xff] }
  0xd6   : > { %1171 = vrot.lane.b32.xlu0 %v3669_v31, %s2952_s21  ;;  %v3919_v7 = vld [vmem:[#allocation2 + $0x8a] sm:$0xff]  ;;  %v2251_v31 = vsel %vm3844_vm13, %v3937_v22, 0.0 }
  0xd7   : > { %v1405_v37 = vpop.permute.xlu1 %1404  ;;  %v2360_v44 = vld [vmem:[#allocation3 + $0x48] sm:$0xff]  ;;  %v2235_v56 = vsel %vm3832_vm0, %v3919_v7, 0.0 }
  0xd8   : > { %1443 = vst.msk [vmem:[#allocation3 + $0x50] sm:$0xff] %vm4163_vm10, %v1405_v37  ;;  %v1391_v29 = vpop.permute.xlu0 %1390  ;;  %2862 = vmatmul.mubr.msk.bf16.vlgmr.msra.gmra.mrb[0].mxu1 %vm4164_vm9, %v2360_v44  ;;  %v1912_v37 = vld [vmem:[#allocation2 + $0x80] sm:$0xff] }
  0xd9   : > { %1436 = vst.msk [vmem:[#allocation3 + $0x18] sm:$0xff] %vm4163_vm10, %v1391_v29  ;;  %1187 = vrot.lane.b32.xlu1 %v3680_v53, %s2952_s21  ;;  %v1349_v53 = vsel %vm3844_vm13, %v3693_v38, 0.0  ;;  %v1359_v38 = vpack.c.bf16 %v1335_v47, %v3806_v16  ;;  %v3946_v44 = vld [vmem:[#allocation2 + $0x102] sm:$0xff]  ;;  %v1944_v52 = vsel %vm3746_vm7, %v1912_v37, 0.0  ;;  %v1978_v47 = vpack.c.bf16 %v3897_v28, %v1960_v11  ;;  %v2205_v28 = vld [vmem:[#allocation2 + $0x9a] sm:$0xff] }
  0xda   : > { %2296 = vrot.lane.b32.xlu0 %v2259_v14, %s2959_s12  ;;  %v1366_v1 = vpack.c.bf16 %v1349_v53, %v3702_v42  ;;  %v1367_v42 = vpack.c.bf16 %v1351_v58, %v3824_v13  ;;  %v1786_v14 = vsel %vm3849_vm14, %v3919_v7, 0.0  ;;  %v1913_v29 = vld [vmem:[#allocation2 + $0x88] sm:$0xff]  ;;  %v1930_v53 = vld [vmem:[#allocation2 + $0x110] sm:$0xff]  ;;  %v2237_v6 = vsel %vm3849_vm14, %v2205_v28, 0.0 }
  0xdb   : > { %v1407_v2 = vpop.permute.xlu1 %1406  ;;  %v1970_v21 = vpack.c.bf16 %v1913_v29, %v1944_v52  ;;  %vm4235_vm7 = vcmask 195712   ;;  %vm4241_vm14 = vcmask 261312  }
  0xdc   : > { %1444 = vst.msk [vmem:[#allocation3 + $0x58] sm:$0xff] %vm4163_vm10, %v1407_v2  ;;  %v1550_v45 = vpop.permute.xlu0 %1549  ;;  %v1914_v2 = vld [vmem:[#allocation2 + $0x90] sm:$0xff]  ;;  %vm4242_vm15 = vmmov %vm4241_vm14 }
  0xdd   : > { %1596 = vst.msk [vmem:[#allocation3 + $0x10] sm:$0xff] %vm4162_vm12, %v1550_v45  ;;  %2312 = vrot.lane.b32.xlu1 %v2267_v54, %s2959_s12 }
  0xde   : > { %1173 = vrot.lane.b32.xlu0 %v3764_v30, %s2952_s21 }
  0xdf   : > { %v1566_v25 = vpop.permute.xlu1 %1565 }
  0xe0   : > { %1604 = vst.msk [vmem:[#allocation3 + $0x50] sm:$0xff] %vm4162_vm12, %v1566_v25  ;;  %v1552_v0 = vpop.permute.xlu0 %1551 }
  0xe1   : > { %1597 = vst.msk [vmem:[#allocation3 + $0x18] sm:$0xff] %vm4162_vm12, %v1552_v0  ;;  %1189 = vrot.lane.b32.xlu1 %v3776_v4, %s2952_s21 }
  0xe2   : > { %1396 = vrot.lane.b32.xlu0 %v1358_v55, %s2953_s22  ;;  %v1946_v55 = vsel %vm3423_vm4, %v1914_v2, 0.0  ;;  %vm4233_vm4 = vcmask 588800  }
  0xe3   : > { %v1568_v34 = vpop.permute.xlu1 %1567  ;;  %v1971_v0 = vpack.c.bf16 %v1915_v10, %v1946_v55  ;;  %vm4236_vm8 = vmmov %vm4233_vm4 }
  0xe4   : > { %1605 = vst.msk [vmem:[#allocation3 + $0x58] sm:$0xff] %vm4162_vm12, %v1568_v34  ;;  %v1679_v35 = vpop.permute.xlu0 %1678  ;;  %vm4229_vm12 = vcmask 392512  }
  0xe5   : > { %1725 = vst.msk [vmem:[#allocation3 + $0x10] sm:$0xff] %vm1722_vm1, %v1679_v35  ;;  %1412 = vrot.lane.b32.xlu1 %v1366_v1, %s2953_s22  ;;  %vm4230_vm10 = vmmov %vm4229_vm12  ;;  %v1962_v1 = vsel %vm3784_vm11, %v1930_v53, 0.0  ;;  %v2076_v35 = vld [vmem:[#allocation2 + $0x99] sm:$0xff] }
  0xe6   : > { %1398 = vrot.lane.b32.xlu0 %v1359_v38, %s2953_s22  ;;  %vm4231_vm9 = vmmov %vm4230_vm10  ;;  %v1979_v58 = vpack.c.bf16 %v1931_v23, %v1962_v1  ;;  %v2100_v43 = vpack.c.bf16 %v2076_v35, %v2075_v57 }
  0xe7   : > { %v1695_v40 = vpop.permute.xlu1 %1694  ;;  %vm4238_vm11 = vmmov %vm4233_vm4 }
  0xe8   : > { %1733 = vst.msk [vmem:[#allocation3 + $0x50] sm:$0xff] %vm1722_vm1, %v1695_v40  ;;  %v1681_v33 = vpop.permute.xlu0 %1680 }
  0xe9   : > { %1726 = vst.msk [vmem:[#allocation3 + $0x18] sm:$0xff] %vm1722_vm1, %v1681_v33  ;;  %1414 = vrot.lane.b32.xlu1 %v1367_v42, %s2953_s22 }
  0xea   : > { %1557 = vrot.lane.b32.xlu0 %v1519_v15, %s2954_s23  ;;  %v2091_v15 = vld [vmem:[#allocation2 + $0x111] sm:$0xff] }
  0xeb   : > { %v1697_v18 = vpop.permute.xlu1 %1696  ;;  %v2108_v36 = vpack.c.bf16 %v2092_v3, %v2091_v15 }
  0xec   : > { %1734 = vst.msk [vmem:[#allocation3 + $0x58] sm:$0xff] %vm1722_vm1, %v1697_v18  ;;  %v1840_v46 = vpop.permute.xlu0 %1839  ;;  %v2260_v18 = vpack.c.bf16 %v2235_v56, %v3932_v41 }
  0xed   : > { %1886 = vst.msk [vmem:[#allocation3 + $0x10] sm:$0xff] %vm4229_vm12, %v1840_v46  ;;  %1573 = vrot.lane.b32.xlu1 %v1527_v26, %s2954_s23  ;;  %vm4232_vm12 = vmmov %vm4231_vm9 }
  0xee   : > { %1559 = vrot.lane.b32.xlu0 %v3431_v59, %s2954_s23  ;;  %v1784_v59 = vsel %vm3832_vm0, %v3790_v48, 0.0  ;;  %v1800_v48 = vsel %vm3844_vm13, %v3811_v12, 0.0  ;;  %v1810_v12 = vpack.c.bf16 %v1786_v14, %v3932_v41  ;;  %vm4239_vm0 = vmmov %vm4235_vm7 }
  0xef   : > { %v1856_v20 = vpop.permute.xlu1 %1855  ;;  %v1809_v19 = vpack.c.bf16 %v1784_v59, %v3806_v16  ;;  %v1817_v16 = vpack.c.bf16 %v1800_v48, %v3824_v13  ;;  %v1818_v13 = vpack.c.bf16 %v1802_v5, %v3946_v44  ;;  %vm4240_vm13 = vmmov %vm4239_vm0 }
  0xf0   : > { %1894 = vst.msk [vmem:[#allocation3 + $0x50] sm:$0xff] %vm4230_vm10, %v1856_v20  ;;  %v1842_v51 = vpop.permute.xlu0 %1841  ;;  %v2204_v20 = vld [vmem:[#allocation2 + $0x92] sm:$0xff]  ;;  %vm4234_vm10 = vmmov %vm4233_vm4 }
  0xf1   : > { %1887 = vst.msk [vmem:[#allocation3 + $0x18] sm:$0xff] %vm4231_vm9, %v1842_v51  ;;  %1575 = vrot.lane.b32.xlu1 %v1528_v60, %s2954_s23  ;;  %v2261_v8 = vpack.c.bf16 %v2237_v6, %v2204_v20  ;;  %vm4237_vm9 = vmmov %vm4235_vm7 }
  0xf2   : > { %1686 = vrot.lane.b32.xlu0 %v3764_v30, %s2955_s24  ;;  %v3924_v30 = vpack.c.bf16 %v1641_v62, %v1640_v9  ;;  %v2220_v9 = vld [vmem:[#allocation2 + $0x112] sm:$0xff] }
  0xf3   : > { %v1858_v61 = vpop.permute.xlu1 %1857 }
  0xf4   : > { %1895 = vst.msk [vmem:[#allocation3 + $0x58] sm:$0xff] %vm4232_vm12, %v1858_v61  ;;  %v2001_v50 = vpop.permute.xlu0 %2000  ;;  %vm4243_vm12 = vmmov %vm4241_vm14 }
  0xf5   : > { %2047 = vst.msk [vmem:[#allocation3 + $0x10] sm:$0xff] %vm2044_vm3, %v2001_v50  ;;  %1702 = vrot.lane.b32.xlu1 %v3776_v4, %s2955_s24  ;;  %v2269_v50 = vpack.c.bf16 %v2253_v24, %v2220_v9 }
  0xf6   : > { %1688 = vrot.lane.b32.xlu0 %v3913_v39, %s2955_s24 }
  0xf7   : > { %v2017_v17 = vpop.permute.xlu1 %2016 }
  0xf8   : > { %2055 = vst.msk [vmem:[#allocation3 + $0x50] sm:$0xff] %vm2044_vm3, %v2017_v17  ;;  %v2003_v4 = vpop.permute.xlu0 %2002 }
  0xf9   : > { %2048 = vst.msk [vmem:[#allocation3 + $0x18] sm:$0xff] %vm2044_vm3, %v2003_v4  ;;  %1704 = vrot.lane.b32.xlu1 %v3924_v30, %s2955_s24 }
  0xfa   : > { %1847 = vrot.lane.b32.xlu0 %v1809_v19, %s2956_s25 }
  0xfb   : > { %v2019_v32 = vpop.permute.xlu1 %2018 }
  0xfc   : > { %2056 = vst.msk [vmem:[#allocation3 + $0x58] sm:$0xff] %vm2044_vm3, %v2019_v32  ;;  %v2130_v54 = vpop.permute.xlu0 %2129 }
  0xfd   : > { %2176 = vst.msk [vmem:[#allocation3 + $0x10] sm:$0xff] %vm2173_vm2, %v2130_v54  ;;  %1863 = vrot.lane.b32.xlu1 %v1817_v16, %s2956_s25 }
  0xfe   : > { %1849 = vrot.lane.b32.xlu0 %v1810_v12, %s2956_s25 }
  0xff   : > { %v2146_v45 = vpop.permute.xlu1 %2145 }
 0x100   : > { %2184 = vst.msk [vmem:[#allocation3 + $0x50] sm:$0xff] %vm2173_vm2, %v2146_v45  ;;  %v2132_v25 = vpop.permute.xlu0 %2131 }
 0x101   : > { %2177 = vst.msk [vmem:[#allocation3 + $0x18] sm:$0xff] %vm2173_vm2, %v2132_v25  ;;  %1865 = vrot.lane.b32.xlu1 %v1818_v13, %s2956_s25 }
 0x102   : > { %2008 = vrot.lane.b32.xlu0 %v1970_v21, %s2957_s28 }
 0x103   : > { %v2148_v38 = vpop.permute.xlu1 %2147 }
 0x104   : > { %2185 = vst.msk [vmem:[#allocation3 + $0x58] sm:$0xff] %vm2173_vm2, %v2148_v38  ;;  %v2291_v63 = vpop.permute.xlu0 %2290 }
 0x105   : > { %2337 = vst.msk [vmem:[#allocation3 + $0x10] sm:$0xff] %vm2334_vm6, %v2291_v63  ;;  %2024 = vrot.lane.b32.xlu1 %v1978_v47, %s2957_s28 }
 0x106   : > { %2010 = vrot.lane.b32.xlu0 %v1971_v0, %s2957_s28 }
 0x107   : > { %v2307_v34 = vpop.permute.xlu1 %2306 }
 0x108   : > { %2345 = vst.msk [vmem:[#allocation3 + $0x50] sm:$0xff] %vm2334_vm6, %v2307_v34  ;;  %v1168_v42 = vpop.permute.xlu0 %1167 }
 0x109   : > { %1212 = vst.msk [vmem:[#allocation3 + $0x20] sm:$0xff] %vm1207_vm5, %v1168_v42  ;;  %2026 = vrot.lane.b32.xlu1 %v1979_v58, %s2957_s28 }
 0x10a   : > { %2137 = vrot.lane.b32.xlu0 %v3913_v39, %s2958_s7  ;;  %v2268_v39 = vpack.c.bf16 %v2251_v31, %v3946_v44 }
 0x10b   : > { %v1184_v40 = vpop.permute.xlu1 %1183 }
 0x10c   : > { %1220 = vst.msk [vmem:[#allocation3 + $0x60] sm:$0xff] %vm1207_vm5, %v1184_v40  ;;  %v2293_v33 = vpop.permute.xlu0 %2292  ;;  %v2353_v26 = vld [vmem:[#allocation3 + $0x10] sm:$0xff] }
 0x10d   : > { %2338 = vst.msk [vmem:[#allocation3 + $0x18] sm:$0xff] %vm2334_vm6, %v2293_v33  ;;  %2153 = vrot.lane.b32.xlu1 %v3924_v30, %s2958_s7  ;;  %2849 = vmatprep.mubr.msk.bf16.mxu0 %vm4233_vm4, %v2353_v26  ;;  %vm4244_vm4 = vmmov %vm4243_vm12 }
 0x10e   : > { %2139 = vrot.lane.b32.xlu0 %v2100_v43, %s2958_s7 }
 0x10f   : > { %v2309_v46 = vpop.permute.xlu1 %2308  ;;  %v2361_v60 = vld [vmem:[#allocation3 + $0x50] sm:$0xff] }
 0x110   : > { %2346 = vst.msk [vmem:[#allocation3 + $0x58] sm:$0xff] %vm2334_vm6, %v2309_v46  ;;  %v1170_v51 = vpop.permute.xlu0 %1169  ;;  %2865 = vmatprep.mubr.msk.bf16.mxu1 %vm4234_vm10, %v2361_v60  ;;  %vm4245_vm10 = vcmask 392512  }
 0x111   : > { %1213 = vst.msk [vmem:[#allocation3 + $0x28] sm:$0xff] %vm1207_vm5, %v1170_v51  ;;  %2155 = vrot.lane.b32.xlu1 %v2108_v36, %s2958_s7 }
 0x112   : > { %2298 = vrot.lane.b32.xlu0 %v2260_v18, %s2959_s12 }
 0x113   : > { %v1186_v62 = vpop.permute.xlu1 %1185 }
 0x114   : > { %1221 = vst.msk [vmem:[#allocation3 + $0x68] sm:$0xff] %vm1207_vm5, %v1186_v62  ;;  %v1393_v61 = vpop.permute.xlu0 %1392  ;;  %v2354_v59 = vld [vmem:[#allocation3 + $0x18] sm:$0xff] }
 0x115   : > { %1437 = vst.msk [vmem:[#allocation3 + $0x20] sm:$0xff] %vm4235_vm7, %v1393_v61  ;;  %2314 = vrot.lane.b32.xlu1 %v2268_v39, %s2959_s12  ;;  %2850 = vmatmul.mubr.msk.bf16.gmra.mrb[4].mxu0 %vm4236_vm8, %v2354_v59  ;;  %vm4246_vm7 = vmmov %vm4245_vm10 }
 0x116   : > { %2300 = vrot.lane.b32.xlu0 %v2261_v8, %s2959_s12  ;;  %vm4247_vm8 = vmmov %vm4246_vm7 }
 0x117   : > { %v1409_v7 = vpop.permute.xlu1 %1408  ;;  %v2362_v30 = vld [vmem:[#allocation3 + $0x58] sm:$0xff] }
 0x118   : > { %1445 = vst.msk [vmem:[#allocation3 + $0x60] sm:$0xff] %vm4237_vm9, %v1409_v7  ;;  %v1395_v27 = vpop.permute.xlu0 %1394  ;;  %2866 = vmatmul.mubr.msk.bf16.gmra.mrb[4].mxu1 %vm4238_vm11, %v2362_v30  ;;  %vm4248_vm9 = vmmov %vm4246_vm7 }
 0x119   : > { %1438 = vst.msk [vmem:[#allocation3 + $0x28] sm:$0xff] %vm4239_vm0, %v1395_v27  ;;  %2316 = vrot.lane.b32.xlu1 %v2269_v50, %s2959_s12  ;;  %vm4249_vm0 = vmmov %vm4238_vm11 }
 0x11b   : > { %v1411_v19 = vpop.permute.xlu1 %1410 }
 0x11c   : > { %1446 = vst.msk [vmem:[#allocation3 + $0x68] sm:$0xff] %vm4240_vm13, %v1411_v19  ;;  %v1554_v48 = vpop.permute.xlu0 %1553 }
 0x11d   : > { %1598 = vst.msk [vmem:[#allocation3 + $0x20] sm:$0xff] %vm4241_vm14, %v1554_v48  ;;  %vm4250_vm14 = vmmov %vm4249_vm0 }
 0x11f   : > { %v1570_v17 = vpop.permute.xlu1 %1569 }
 0x120   : > { %1606 = vst.msk [vmem:[#allocation3 + $0x60] sm:$0xff] %vm4242_vm15, %v1570_v17  ;;  %v1556_v41 = vpop.permute.xlu0 %1555  ;;  %vm4251_vm15 = vmmov %vm4240_vm13 }
 0x121   : > { %1599 = vst.msk [vmem:[#allocation3 + $0x28] sm:$0xff] %vm4243_vm12, %v1556_v41  ;;  %vm4252_vm12 = vmmov %vm4249_vm0 }
 0x123   : > { %v1572_v14 = vpop.permute.xlu1 %1571 }
 0x124   : > { %1607 = vst.msk [vmem:[#allocation3 + $0x68] sm:$0xff] %vm4244_vm4, %v1572_v14  ;;  %v1683_v22 = vpop.permute.xlu0 %1682  ;;  %vm4253_vm4 = vmmov %vm4240_vm13 }
 0x125   : > { %1727 = vst.msk [vmem:[#allocation3 + $0x20] sm:$0xff] %vm1722_vm1, %v1683_v22 }
 0x127   : > { %v1699_v4 = vpop.permute.xlu1 %1698 }
 0x128   : > { %1735 = vst.msk [vmem:[#allocation3 + $0x60] sm:$0xff] %vm1722_vm1, %v1699_v4  ;;  %v1685_v37 = vpop.permute.xlu0 %1684 }
 0x129   : > { %1728 = vst.msk [vmem:[#allocation3 + $0x28] sm:$0xff] %vm1722_vm1, %v1685_v37 }
 0x12b   : > { %v1701_v16 = vpop.permute.xlu1 %1700 }
 0x12c   : > { %1736 = vst.msk [vmem:[#allocation3 + $0x68] sm:$0xff] %vm1722_vm1, %v1701_v16  ;;  %v1844_v12 = vpop.permute.xlu0 %1843 }
 0x12d   : > { %1888 = vst.msk [vmem:[#allocation3 + $0x20] sm:$0xff] %vm4245_vm10, %v1844_v12  ;;  %vm4254_vm10 = vmmov %vm4253_vm4 }
 0x12f   : > { %v1860_v44 = vpop.permute.xlu1 %1859 }
 0x130   : > { %1896 = vst.msk [vmem:[#allocation3 + $0x60] sm:$0xff] %vm4246_vm7, %v1860_v44  ;;  %v1846_v5 = vpop.permute.xlu0 %1845 }
 0x131   : > { %1889 = vst.msk [vmem:[#allocation3 + $0x28] sm:$0xff] %vm4247_vm8, %v1846_v5 }
 0x133   : > { %v1862_v32 = vpop.permute.xlu1 %1861 }
 0x134   : > { %1897 = vst.msk [vmem:[#allocation3 + $0x68] sm:$0xff] %vm4248_vm9, %v1862_v32  ;;  %v2005_v29 = vpop.permute.xlu0 %2004 }
 0x135   : > { %2049 = vst.msk [vmem:[#allocation3 + $0x20] sm:$0xff] %vm2044_vm3, %v2005_v29 }
 0x137   : > { %v2021_v52 = vpop.permute.xlu1 %2020 }
 0x138   : > { %2057 = vst.msk [vmem:[#allocation3 + $0x60] sm:$0xff] %vm2044_vm3, %v2021_v52  ;;  %v2007_v54 = vpop.permute.xlu0 %2006 }
 0x139   : > { %2050 = vst.msk [vmem:[#allocation3 + $0x28] sm:$0xff] %vm2044_vm3, %v2007_v54 }
 0x13b   : > { %v2023_v2 = vpop.permute.xlu1 %2022 }
 0x13c   : > { %2058 = vst.msk [vmem:[#allocation3 + $0x68] sm:$0xff] %vm2044_vm3, %v2023_v2  ;;  %v2134_v13 = vpop.permute.xlu0 %2133 }
 0x13d   : > { %2178 = vst.msk [vmem:[#allocation3 + $0x20] sm:$0xff] %vm2173_vm2, %v2134_v13 }
 0x13f   : > { %v2150_v21 = vpop.permute.xlu1 %2149 }
 0x140   : > { %2186 = vst.msk [vmem:[#allocation3 + $0x60] sm:$0xff] %vm2173_vm2, %v2150_v21  ;;  %v2136_v11 = vpop.permute.xlu0 %2135 }
 0x141   : > { %2179 = vst.msk [vmem:[#allocation3 + $0x28] sm:$0xff] %vm2173_vm2, %v2136_v11 }
 0x143   : > { %v2152_v45 = vpop.permute.xlu1 %2151 }
 0x144   : > { %2187 = vst.msk [vmem:[#allocation3 + $0x68] sm:$0xff] %vm2173_vm2, %v2152_v45  ;;  %v2295_v10 = vpop.permute.xlu0 %2294 }
 0x145   : > { %2339 = vst.msk [vmem:[#allocation3 + $0x20] sm:$0xff] %vm2334_vm6, %v2295_v10 }
 0x147   : > { %v2311_v55 = vpop.permute.xlu1 %2310 }
 0x148   : > { %2347 = vst.msk [vmem:[#allocation3 + $0x60] sm:$0xff] %vm2334_vm6, %v2311_v55  ;;  %v1172_v53 = vpop.permute.xlu0 %1171 }
 0x149   : > { %1214 = vst.msk [vmem:[#allocation3 + $0x30] sm:$0xff] %vm1207_vm5, %v1172_v53 }
 0x14b   : > { %v1188_v25 = vpop.permute.xlu1 %1187 }
 0x14c   : > { %1222 = vst.msk [vmem:[#allocation3 + $0x70] sm:$0xff] %vm1207_vm5, %v1188_v25  ;;  %v2297_v47 = vpop.permute.xlu0 %2296  ;;  %v2355_v0 = vld [vmem:[#allocation3 + $0x20] sm:$0xff] }
 0x14d   : > { %2340 = vst.msk [vmem:[#allocation3 + $0x28] sm:$0xff] %vm2334_vm6, %v2297_v47  ;;  %2853 = vmatprep.mubr.msk.bf16.mxu0 %vm4238_vm11, %v2355_v0  ;;  %vm4259_vm11 = vcmask 392512  }
 0x14f   : > { %v2313_v23 = vpop.permute.xlu1 %2312  ;;  %v2363_v1 = vld [vmem:[#allocation3 + $0x60] sm:$0xff] }
 0x150   : > { %2348 = vst.msk [vmem:[#allocation3 + $0x68] sm:$0xff] %vm2334_vm6, %v2313_v23  ;;  %v1174_v38 = vpop.permute.xlu0 %1173  ;;  %2869 = vmatprep.mubr.msk.bf16.mxu1 %vm4249_vm0, %v2363_v1  ;;  %vm4260_vm0 = vmmov %vm4259_vm11 }
 0x151   : > { %1215 = vst.msk [vmem:[#allocation3 + $0x38] sm:$0xff] %vm1207_vm5, %v1174_v38 }
 0x153   : > { %v1190_v63 = vpop.permute.xlu1 %1189 }
 0x154   : > { %1223 = vst.msk [vmem:[#allocation3 + $0x78] sm:$0xff] %vm1207_vm5, %v1190_v63  ;;  %v1397_v58 = vpop.permute.xlu0 %1396  ;;  %v2356_v34 = vld [vmem:[#allocation3 + $0x28] sm:$0xff]  ;;  %vm4255_vm5 = vcmask 261312  }
 0x155   : > { %1439 = vst.msk [vmem:[#allocation3 + $0x30] sm:$0xff] %vm4240_vm13, %v1397_v58  ;;  %2854 = vmatmul.mubr.msk.bf16.gmra.mrb[8].mxu0 %vm4250_vm14, %v2356_v34  ;;  %vm4256_vm7 = vmmov %vm4255_vm5 }
 0x156   : > { %vm4257_vm8 = vmmov %vm4255_vm5 }
 0x157   : > { %v1413_v57 = vpop.permute.xlu1 %1412  ;;  %v2364_v35 = vld [vmem:[#allocation3 + $0x68] sm:$0xff]  ;;  %vm4258_vm9 = vmmov %vm4255_vm5 }
 0x158   : > { %1447 = vst.msk [vmem:[#allocation3 + $0x70] sm:$0xff] %vm4251_vm15, %v1413_v57  ;;  %v1399_v42 = vpop.permute.xlu0 %1398  ;;  %2870 = vmatmul.mubr.msk.bf16.gmra.mrb[8].mxu1 %vm4252_vm12, %v2364_v35  ;;  %vm4261_vm13 = vmmov %vm4260_vm0 }
 0x159   : > { %1440 = vst.msk [vmem:[#allocation3 + $0x38] sm:$0xff] %vm4253_vm4, %v1399_v42  ;;  %vm4262_vm14 = vmmov %vm4260_vm0 }
 0x15b   : > { %v1415_v43 = vpop.permute.xlu1 %1414 }
 0x15c   : > { %1448 = vst.msk [vmem:[#allocation3 + $0x78] sm:$0xff] %vm4254_vm10, %v1415_v43  ;;  %v1558_v15 = vpop.permute.xlu0 %1557 }
 0x15d   : > { %1600 = vst.msk [vmem:[#allocation3 + $0x30] sm:$0xff] %vm4255_vm5, %v1558_v15 }
 0x15f   : > { %v1574_v3 = vpop.permute.xlu1 %1573 }
 0x160   : > { %1608 = vst.msk [vmem:[#allocation3 + $0x70] sm:$0xff] %vm4256_vm7, %v1574_v3  ;;  %v1560_v40 = vpop.permute.xlu0 %1559 }
 0x161   : > { %1601 = vst.msk [vmem:[#allocation3 + $0x38] sm:$0xff] %vm4257_vm8, %v1560_v40 }
 0x163   : > { %v1576_v56 = vpop.permute.xlu1 %1575 }
 0x164   : > { %1609 = vst.msk [vmem:[#allocation3 + $0x78] sm:$0xff] %vm4258_vm9, %v1576_v56  ;;  %v1687_v33 = vpop.permute.xlu0 %1686 }
 0x165   : > { %1729 = vst.msk [vmem:[#allocation3 + $0x30] sm:$0xff] %vm1722_vm1, %v1687_v33 }
 0x167   : > { %v1703_v26 = vpop.permute.xlu1 %1702 }
 0x168   : > { %1737 = vst.msk [vmem:[#allocation3 + $0x70] sm:$0xff] %vm1722_vm1, %v1703_v26  ;;  %v1689_v28 = vpop.permute.xlu0 %1688 }
 0x169   : > { %1730 = vst.msk [vmem:[#allocation3 + $0x38] sm:$0xff] %vm1722_vm1, %v1689_v28 }
 0x16b   : > { %v1705_v36 = vpop.permute.xlu1 %1704 }
 0x16c   : > { %1738 = vst.msk [vmem:[#allocation3 + $0x78] sm:$0xff] %vm1722_vm1, %v1705_v36  ;;  %v1848_v18 = vpop.permute.xlu0 %1847  ;;  %vm4263_vm1 = vmmov %vm4252_vm12 }
 0x16d   : > { %1890 = vst.msk [vmem:[#allocation3 + $0x30] sm:$0xff] %vm4259_vm11, %v1848_v18  ;;  %vm4266_vm15 = vmmov %vm4263_vm1 }
 0x16f   : > { %v1864_v31 = vpop.permute.xlu1 %1863 }
 0x170   : > { %1898 = vst.msk [vmem:[#allocation3 + $0x70] sm:$0xff] %vm4260_vm0, %v1864_v31  ;;  %v1850_v46 = vpop.permute.xlu0 %1849 }
 0x171   : > { %1891 = vst.msk [vmem:[#allocation3 + $0x38] sm:$0xff] %vm4261_vm13, %v1850_v46 }
 0x173   : > { %v1866_v60 = vpop.permute.xlu1 %1865 }
 0x174   : > { %1899 = vst.msk [vmem:[#allocation3 + $0x78] sm:$0xff] %vm4262_vm14, %v1866_v60  ;;  %v2009_v20 = vpop.permute.xlu0 %2008 }
 0x175   : > { %2051 = vst.msk [vmem:[#allocation3 + $0x30] sm:$0xff] %vm2044_vm3, %v2009_v20 }
 0x177   : > { %v2025_v6 = vpop.permute.xlu1 %2024 }
 0x178   : > { %2059 = vst.msk [vmem:[#allocation3 + $0x70] sm:$0xff] %vm2044_vm3, %v2025_v6  ;;  %v2011_v49 = vpop.permute.xlu0 %2010 }
 0x179   : > { %2052 = vst.msk [vmem:[#allocation3 + $0x38] sm:$0xff] %vm2044_vm3, %v2011_v49 }
 0x17b   : > { %v2027_v51 = vpop.permute.xlu1 %2026 }
 0x17c   : > { %2060 = vst.msk [vmem:[#allocation3 + $0x78] sm:$0xff] %vm2044_vm3, %v2027_v51  ;;  %v2138_v39 = vpop.permute.xlu0 %2137  ;;  %vm4264_vm3 = vmmov %vm4263_vm1 }
 0x17d   : > { %2180 = vst.msk [vmem:[#allocation3 + $0x30] sm:$0xff] %vm2173_vm2, %v2138_v39 }
 0x17f   : > { %v2154_v8 = vpop.permute.xlu1 %2153 }
 0x180   : > { %2188 = vst.msk [vmem:[#allocation3 + $0x70] sm:$0xff] %vm2173_vm2, %v2154_v8  ;;  %v2140_v9 = vpop.permute.xlu0 %2139 }
 0x181   : > { %2181 = vst.msk [vmem:[#allocation3 + $0x38] sm:$0xff] %vm2173_vm2, %v2140_v9 }
 0x183   : > { %v2156_v24 = vpop.permute.xlu1 %2155 }
 0x184   : > { %2189 = vst.msk [vmem:[#allocation3 + $0x78] sm:$0xff] %vm2173_vm2, %v2156_v24  ;;  %v2299_v62 = vpop.permute.xlu0 %2298  ;;  %vm4265_vm2 = vmmov %vm4263_vm1 }
 0x185   : > { %2341 = vst.msk [vmem:[#allocation3 + $0x30] sm:$0xff] %vm2334_vm6, %v2299_v62 }
 0x187   : > { %v2315_v61 = vpop.permute.xlu1 %2314 }
 0x188   : > { %2349 = vst.msk [vmem:[#allocation3 + $0x70] sm:$0xff] %vm2334_vm6, %v2315_v61  ;;  %v2301_v59 = vpop.permute.xlu0 %2300 }
 0x189   : > { %2342 = vst.msk [vmem:[#allocation3 + $0x38] sm:$0xff] %vm2334_vm6, %v2301_v59 }
 0x18b   : > { %v2317_v50 = vpop.permute.xlu1 %2316 }
 0x18c   : > { %2350 = vst.msk [vmem:[#allocation3 + $0x78] sm:$0xff] %vm2334_vm6, %v2317_v50  ;;  %v2357_v7 = vld [vmem:[#allocation3 + $0x30] sm:$0xff]  ;;  %vm2617_vm6 = vcmask 130048  }
 0x18d   : > { %2857 = vmatprep.mubr.msk.bf16.mxu0 %vm4263_vm1, %v2357_v7 }
 0x18f   : > { %v2365_v30 = vld [vmem:[#allocation3 + $0x70] sm:$0xff] }
 0x190   : > { %2873 = vmatprep.mubr.msk.bf16.mxu1 %vm4264_vm3, %v2365_v30  ;;  %v2358_v27 = vld [vmem:[#allocation3 + $0x38] sm:$0xff] }
 0x191   : > { %2858 = vmatmul.mubr.msk.bf16.gmra.mrb[12].mxu0 %vm4265_vm2, %v2358_v27 }
 0x193   : > { %v2366_v19 = vld [vmem:[#allocation3 + $0x78] sm:$0xff] }
 0x194   : > { %2874 = vmatmul.mubr.msk.bf16.gmra.mrb[12].mxu1 %vm4266_vm15, %v2366_v19 }
 0x1a8   : > { %v2847_v48 = vpop.f32.mrb[0].mxu0 }
 0x1a9   : > { %2620 = vst.msk [vmem:[%s4081_s18 + $0x10] sm:$0xff] %vm2617_vm6, %v2847_v48  ;;  %v2490_v17 = vpop.f32.mrb[1].mxu0 }
 0x1aa   : > { %2618 = vst.msk [vmem:[%s4081_s18] sm:$0xff] %vm2617_vm6, %v2490_v17  ;;  %v2848_v41 = vpop.f32.mrb[2].mxu0 }
 0x1ab   : > { %2621 = vst.msk [vmem:[%s4081_s18 + $0x18] sm:$0xff] %vm2617_vm6, %v2848_v41  ;;  %v2493_v14 = vpop.f32.mrb[3].mxu0  ;;  %v2863_v22 = vpop.f32.mrb[0].mxu1 }
 0x1ac   : > { %2619 = vst.msk [vmem:[%s4081_s18 + $0x8] sm:$0xff] %vm2617_vm6, %v2493_v14  ;;  %2636 = vst.msk [vmem:[%s4081_s18 + $0x90] sm:$0xff] %vm2617_vm6, %v2863_v22  ;;  %v2554_v4 = vpop.f32.mrb[1].mxu1 }
 0x1ad   : > { %2634 = vst.msk [vmem:[%s4081_s18 + $0x80] sm:$0xff] %vm2617_vm6, %v2554_v4  ;;  %v2864_v37 = vpop.f32.mrb[2].mxu1 }
 0x1ae   : > { %2637 = vst.msk [vmem:[%s4081_s18 + $0x98] sm:$0xff] %vm2617_vm6, %v2864_v37  ;;  %v2557_v16 = vpop.f32.mrb[3].mxu1 }
 0x1af   : > { %2635 = vst.msk [vmem:[%s4081_s18 + $0x88] sm:$0xff] %vm2617_vm6, %v2557_v16 }
 0x1e8   : > { %v2851_v12 = vpop.f32.mrb[4].mxu0 }
 0x1e9   : > { %2624 = vst.msk [vmem:[%s4081_s18 + $0x30] sm:$0xff] %vm2617_vm6, %v2851_v12  ;;  %v2506_v44 = vpop.f32.mrb[5].mxu0 }
 0x1ea   : > { %2622 = vst.msk [vmem:[%s4081_s18 + $0x20] sm:$0xff] %vm2617_vm6, %v2506_v44  ;;  %v2852_v5 = vpop.f32.mrb[6].mxu0 }
 0x1eb   : > { %2625 = vst.msk [vmem:[%s4081_s18 + $0x38] sm:$0xff] %vm2617_vm6, %v2852_v5  ;;  %v2509_v32 = vpop.f32.mrb[7].mxu0  ;;  %v2867_v29 = vpop.f32.mrb[4].mxu1 }
 0x1ec   : > { %2623 = vst.msk [vmem:[%s4081_s18 + $0x28] sm:$0xff] %vm2617_vm6, %v2509_v32  ;;  %2640 = vst.msk [vmem:[%s4081_s18 + $0xb0] sm:$0xff] %vm2617_vm6, %v2867_v29  ;;  %v2570_v52 = vpop.f32.mrb[5].mxu1 }
 0x1ed   : > { %2638 = vst.msk [vmem:[%s4081_s18 + $0xa0] sm:$0xff] %vm2617_vm6, %v2570_v52  ;;  %v2868_v54 = vpop.f32.mrb[6].mxu1 }
 0x1ee   : > { %2641 = vst.msk [vmem:[%s4081_s18 + $0xb8] sm:$0xff] %vm2617_vm6, %v2868_v54  ;;  %v2573_v2 = vpop.f32.mrb[7].mxu1 }
 0x1ef   : > { %2639 = vst.msk [vmem:[%s4081_s18 + $0xa8] sm:$0xff] %vm2617_vm6, %v2573_v2 }
 0x228   : > { %v2855_v13 = vpop.f32.mrb[8].mxu0 }
 0x229   : > { %2628 = vst.msk [vmem:[%s4081_s18 + $0x50] sm:$0xff] %vm2617_vm6, %v2855_v13  ;;  %v2522_v21 = vpop.f32.mrb[9].mxu0 }
 0x22a   : > { %2626 = vst.msk [vmem:[%s4081_s18 + $0x40] sm:$0xff] %vm2617_vm6, %v2522_v21  ;;  %v2856_v11 = vpop.f32.mrb[10].mxu0 }
 0x22b   : > { %2629 = vst.msk [vmem:[%s4081_s18 + $0x58] sm:$0xff] %vm2617_vm6, %v2856_v11  ;;  %v2525_v45 = vpop.f32.mrb[11].mxu0  ;;  %v2871_v10 = vpop.f32.mrb[8].mxu1 }
 0x22c   : > { %2627 = vst.msk [vmem:[%s4081_s18 + $0x48] sm:$0xff] %vm2617_vm6, %v2525_v45  ;;  %2644 = vst.msk [vmem:[%s4081_s18 + $0xd0] sm:$0xff] %vm2617_vm6, %v2871_v10  ;;  %v2586_v55 = vpop.f32.mrb[9].mxu1 }
 0x22d   : > { %2642 = vst.msk [vmem:[%s4081_s18 + $0xc0] sm:$0xff] %vm2617_vm6, %v2586_v55  ;;  %v2872_v53 = vpop.f32.mrb[10].mxu1 }
 0x22e   : > { %2645 = vst.msk [vmem:[%s4081_s18 + $0xd8] sm:$0xff] %vm2617_vm6, %v2872_v53  ;;  %v2589_v25 = vpop.f32.mrb[11].mxu1 }
 0x22f   : > { %2643 = vst.msk [vmem:[%s4081_s18 + $0xc8] sm:$0xff] %vm2617_vm6, %v2589_v25 }
 0x264   : > { %v2859_v47 = vpop.f32.mrb[12].mxu0 }
 0x265   : > { %2632 = vst.msk [vmem:[%s4081_s18 + $0x70] sm:$0xff] %vm2617_vm6, %v2859_v47  ;;  %v2538_v0 = vpop.f32.mrb[13].mxu0 }
 0x266   : > { %2630 = vst.msk [vmem:[%s4081_s18 + $0x60] sm:$0xff] %vm2617_vm6, %v2538_v0  ;;  %v2860_v23 = vpop.f32.mrb[14].mxu0 }
 0x267   : > { %2633 = vst.msk [vmem:[%s4081_s18 + $0x78] sm:$0xff] %vm2617_vm6, %v2860_v23  ;;  %v2541_v1 = vpop.f32.mrb[15].mxu0  ;;  %v2875_v38 = vpop.f32.mrb[12].mxu1 }
 0x268   : > { %2631 = vst.msk [vmem:[%s4081_s18 + $0x68] sm:$0xff] %vm2617_vm6, %v2541_v1  ;;  %2648 = vst.msk [vmem:[%s4081_s18 + $0xf0] sm:$0xff] %vm2617_vm6, %v2875_v38  ;;  %v2602_v63 = vpop.f32.mrb[13].mxu1 }
 0x269   : > { %2646 = vst.msk [vmem:[%s4081_s18 + $0xe0] sm:$0xff] %vm2617_vm6, %v2602_v63  ;;  %v2876_v58 = vpop.f32.mrb[14].mxu1 }
 0x26a   : > { %2649 = vst.msk [vmem:[%s4081_s18 + $0xf8] sm:$0xff] %vm2617_vm6, %v2876_v58  ;;  %v2605_v34 = vpop.f32.mrb[15].mxu1 }
 0x26b   : > { %2647 = vst.msk [vmem:[%s4081_s18 + $0xe8] sm:$0xff] %vm2617_vm6, %v2605_v34 }
 0x26c PF: > { %s14_s17 = sadd.s32 1, %s2949_s17   ;;  %s4267_s15 = smov %s2945_s16 }
 0x26d   : > { %p11_p5 = scmp.ge.s32.totalorder %s14_s17, 4   ;;  %s4268_s16 = smov %s4270_s0 }
 0x26f   :  { %13 = sbr.rel (!%p11_p5) target bundleno = 2 (0x2), region = 72 }

</bundles_post_ra>
